<compile_context>
chip_gen: v7x
topology: tpu7x:2x2x1
jax: 0.10.0
libtpu: 0.0.40
codegen_flags: <defaults>
</compile_context>

<pallas_src>
import math
import functools

import jax
import jax.numpy as jnp
from jax import lax
from jax.experimental import pallas as pl
from jax.experimental.pallas import tpu as pltpu


# ------------------------------ VMEM budgeting --------------------------------

def _vmem_limit_bytes():
    """~75% of physical VMEM: ~48 MiB on v7x (64 MiB), ~96 MiB on v5e/v6e (128 MiB)."""
    try:
        cap = int(pltpu.get_tpu_info().vmem_capacity_bytes)
    except Exception:
        cap = 64 * 1024 * 1024
    return max(32 * 1024 * 1024, (cap * 3) // 4)


# ----------------------------- in-kernel helpers -------------------------------

def _layernorm(x, g, b, eps=1e-5):
    # x: (R, E) f32, g/b: (1, E) f32
    mu = jnp.mean(x, axis=-1, keepdims=True)
    var = jnp.mean((x - mu) ** 2, axis=-1, keepdims=True)
    return (x - mu) * lax.rsqrt(var + eps) * g + b


# --------------------------- fused transformer stack ---------------------------

def transformer_stack_kernel(num_heads,
                             x_ref,
                             ln1g_ref, ln1b_ref,
                             wqkv_ref, wproj_ref, bproj_ref,
                             ln2g_ref, ln2b_ref,
                             w1_ref, b1_ref, w2_ref, b2_ref,
                             o_ref):
    layer = pl.program_id(1)

    # Layer 0: seed the residual stream (o_ref stays VMEM-resident across layers).
    @pl.when(layer == 0)
    def _():
        o_ref[...] = x_ref[...]

    Bb, T, E = o_ref.shape
    hs = E // num_heads
    R = Bb * T

    x = o_ref[...].reshape(R, E)                       # (R, E) f32 residual stream

    # Causal mask built in-kernel once per grid step (no HBM bias input).
    rows = lax.broadcasted_iota(jnp.int32, (T, T), 0)
    cols = lax.broadcasted_iota(jnp.int32, (T, T), 1)
    mask = jnp.where(rows >= cols, 0.0, -1e30).astype(jnp.float32)[None, :, :]

    # ---- multi-head causal self-attention over ln1(x) ----
    h = _layernorm(x, ln1g_ref[0], ln1b_ref[0]).astype(jnp.bfloat16)
    # fused QKV projection: one lane-dense (R, E) x (E, 3E) MXU matmul; cast once.
    qkv = jnp.dot(h, wqkv_ref[0],
                  preferred_element_type=jnp.float32).astype(jnp.bfloat16)   # (R, 3E)
    qkv3 = qkv.reshape(Bb, T, 3 * E)

    wproj = wproj_ref[0]                               # (E, E) bf16
    acc = jnp.zeros((R, E), jnp.float32)
    # TODO(synk): for long T, replace the dense (T,T) softmax with a flash-style
    # online-softmax loop over key tiles (mandatory to fit 64 MiB VMEM on v7x at
    # realistic E/T); for H >= 8, batch heads into a single dot_general.
    for hd in range(num_heads):                        # static unroll (small H)
        q = qkv3[:, :, hd * hs:(hd + 1) * hs]          # scale pre-folded into Wq
        k = qkv3[:, :, E + hd * hs:E + (hd + 1) * hs]
        v = qkv3[:, :, 2 * E + hd * hs:2 * E + (hd + 1) * hs]
        s = jnp.einsum('btd,bsd->bts', q, k,
                       preferred_element_type=jnp.float32) + mask          # (Bb, T, T)
        p = jnp.exp(s - jnp.max(s, axis=-1, keepdims=True))
        p = p * pl.reciprocal(jnp.sum(p, axis=-1, keepdims=True), approx=True)
        av = jnp.einsum('bts,bsd->btd', p.astype(jnp.bfloat16), v,
                        preferred_element_type=jnp.float32)                # (Bb, T, hs)
        # fold head output straight into the output projection (no lane concat)
        acc = acc + jnp.dot(av.astype(jnp.bfloat16).reshape(R, hs),
                            wproj[hd * hs:(hd + 1) * hs, :],
                            preferred_element_type=jnp.float32)
    x = x + acc + bproj_ref[0]                         # residual (f32)

    # ---- feed-forward over ln2(x) ----
    h2 = _layernorm(x, ln2g_ref[0], ln2b_ref[0]).astype(jnp.bfloat16)
    f = jnp.dot(h2, w1_ref[0], preferred_element_type=jnp.float32) + b1_ref[0]
    f = jnp.maximum(f, 0.0).astype(jnp.bfloat16)
    f = jnp.dot(f, w2_ref[0], preferred_element_type=jnp.float32) + b2_ref[0]
    o_ref[...] = (x + f).reshape(Bb, T, E)             # residual (f32)


def run_transformer_stack(x, stacked, num_heads, vmem_limit):
    B, T, E = x.shape
    L = stacked["wqkv"].shape[0]

    # Process Bb sequences per layer step (amortizes layer-weight DMA by Bb x and
    # grows the matmul M-dim); keep the resident (Bb*T, E) working set modest.
    Bb = B
    while Bb > 1 and (Bb * T > 4096 or B % Bb != 0):
        Bb -= 1

    def layer_spec(a):
        # per-layer block along the leading (layer) axis; full in the trailing dims
        return pl.BlockSpec((1,) + a.shape[1:],
                            lambda bb, l: (l,) + (0,) * (a.ndim - 1))

    names = ("ln1_g", "ln1_b", "wqkv", "wproj", "bproj",
             "ln2_g", "ln2_b", "w1", "b1", "w2", "b2")
    weights = [stacked[n] for n in names]

    return pl.pallas_call(
        functools.partial(transformer_stack_kernel, num_heads),
        out_shape=jax.ShapeDtypeStruct((B, T, E), jnp.float32),
        grid_spec=pltpu.PrefetchScalarGridSpec(
            num_scalar_prefetch=0,
            grid=(B // Bb, L),                          # layer axis last (reduction-like)
            in_specs=[pl.BlockSpec((Bb, T, E), lambda bb, l: (bb, 0, 0))]
                     + [layer_spec(a) for a in weights],
            out_specs=pl.BlockSpec((Bb, T, E), lambda bb, l: (bb, 0, 0)),
        ),
        compiler_params=pltpu.CompilerParams(
            dimension_semantics=("parallel", "arbitrary"),
            vmem_limit_bytes=vmem_limit),
    )(x, *weights)


# ---------------------------- final LN + vocab head ----------------------------

def head_kernel(x_ref, lng_ref, lnb_ref, wout_ref, bout_ref, o_ref):
    h = _layernorm(x_ref[...], lng_ref[...], lnb_ref[...]).astype(jnp.bfloat16)
    o_ref[...] = (jnp.dot(h, wout_ref[...], preferred_element_type=jnp.float32)
                  + bout_ref[...])


def _pad_and_tile(dim, cap, mult):
    """Return (padded_dim, tile). Pads instead of silently using oversized tiles."""
    if dim <= cap:
        return dim, dim                       # full-extent block is always legal
    tile = (cap // mult) * mult
    t = tile
    while t >= mult:                          # prefer an exact divisor (no padding)
        if dim % t == 0:
            return dim, t
        t -= mult
    padded = pl.cdiv(dim, tile) * tile
    return padded, tile


def run_head(x2d, lng, lnb, wout, bout, vmem_limit):
    R, E = x2d.shape
    V = wout.shape[1]
    tv_cap = 4096 if vmem_limit > 80 * 1024 * 1024 else 2048
    Rp, tr = _pad_and_tile(R, 512, 8)         # row tile over flattened (B*T) rows
    Vp, tv = _pad_and_tile(V, tv_cap, 128)    # lane-dense vocab tile
    if Rp != R:
        x2d = jnp.pad(x2d, ((0, Rp - R), (0, 0)))
    if Vp != V:
        wout = jnp.pad(wout, ((0, 0), (0, Vp - V)))
        bout = jnp.pad(bout, ((0, 0), (0, Vp - V)))

    # Grid order (vocab, rows): wout/bout block index is constant along the inner row
    # axis, so the big (E, tv) weight tile is fetched once per vocab tile (not per row
    # tile), cutting head HBM traffic on the dominant tensor.
    # TODO(synk): when targets are given, fuse cross-entropy here (running logsumexp +
    # target-logit gather) so the (B*T, V) f32 logits never round-trip HBM.
    out = pl.pallas_call(
        head_kernel,
        out_shape=jax.ShapeDtypeStruct((Rp, Vp), jnp.float32),
        grid_spec=pltpu.PrefetchScalarGridSpec(
            num_scalar_prefetch=0,
            grid=(Vp // tv, Rp // tr),
            in_specs=[pl.BlockSpec((tr, E), lambda v, r: (r, 0)),
                      pl.BlockSpec((1, E), lambda v, r: (0, 0)),
                      pl.BlockSpec((1, E), lambda v, r: (0, 0)),
                      pl.BlockSpec((E, tv), lambda v, r: (0, v)),
                      pl.BlockSpec((1, tv), lambda v, r: (0, v))],
            out_specs=pl.BlockSpec((tr, tv), lambda v, r: (r, v)),
        ),
        compiler_params=pltpu.CompilerParams(
            dimension_semantics=("parallel", "arbitrary"),
            vmem_limit_bytes=vmem_limit),
    )(x2d, lng, lnb, wout, bout)
    return out[:R, :V]


# -------------------------------- model setup ----------------------------------

def sinusoidal_pet(block_size, embed_dim):
    pos = jnp.arange(block_size, dtype=jnp.float32)[:, None]
    div_term = jnp.exp(jnp.arange(0, embed_dim, 2, dtype=jnp.float32)
                       * -(math.log(10000.0) / embed_dim))
    pet = jnp.zeros((block_size, embed_dim), jnp.float32)
    pet = pet.at[:, 0::2].set(jnp.sin(pos * div_term))
    pet = pet.at[:, 1::2].set(jnp.cos(pos * div_term))
    return pet


def init_params(key, embed_dim, num_heads, num_layers, vocab_size):
    E, H, L, V = embed_dim, num_heads, num_layers, vocab_size
    hs = E // H
    std = 0.02
    keys = iter(jax.random.split(key, L * (3 * H + 3) + 4))

    def lin_w(k, fan_in, fan_out):
        # PyTorch nn.Linear weight is (out, in) ~ N(0, 0.02); store transposed (in, out).
        return (jax.random.normal(k, (fan_out, fan_in), jnp.float32) * std).T

    names = ("ln1_g", "ln1_b", "wqkv", "wproj", "bproj",
             "ln2_g", "ln2_b", "w1", "b1", "w2", "b2")
    layer = {n: [] for n in names}
    scale = float(hs) ** -0.5
    for _ in range(L):
        wq = jnp.concatenate([lin_w(next(keys), E, hs) for _ in range(H)], axis=1)  # (E, E)
        wk = jnp.concatenate([lin_w(next(keys), E, hs) for _ in range(H)], axis=1)
        wv = jnp.concatenate([lin_w(next(keys), E, hs) for _ in range(H)], axis=1)
        # fold 1/sqrt(hs) into Wq; fuse Q/K/V into one (E, 3E) bf16 weight
        layer["wqkv"].append(jnp.concatenate([wq * scale, wk, wv], axis=1).astype(jnp.bfloat16))
        layer["wproj"].append(lin_w(next(keys), H * hs, E).astype(jnp.bfloat16))
        layer["bproj"].append(jnp.zeros((1, E), jnp.float32))
        layer["ln1_g"].append(jnp.ones((1, E), jnp.float32))
        layer["ln1_b"].append(jnp.zeros((1, E), jnp.float32))
        layer["ln2_g"].append(jnp.ones((1, E), jnp.float32))
        layer["ln2_b"].append(jnp.zeros((1, E), jnp.float32))
        layer["w1"].append(lin_w(next(keys), E, 4 * E).astype(jnp.bfloat16))
        layer["b1"].append(jnp.zeros((1, 4 * E), jnp.float32))
        layer["w2"].append(lin_w(next(keys), 4 * E, E).astype(jnp.bfloat16))
        layer["b2"].append(jnp.zeros((1, E), jnp.float32))

    params = {"blocks": {n: jnp.stack(v) for n, v in layer.items()}}
    params["tok_emb"] = jax.random.normal(next(keys), (V, E), jnp.float32) * std
    params["lnf_g"] = jnp.ones((1, E), jnp.float32)
    params["lnf_b"] = jnp.zeros((1, E), jnp.float32)
    params["wout"] = lin_w(next(keys), E, V).astype(jnp.bfloat16)
    params["bout"] = jnp.zeros((1, V), jnp.float32)
    return params


def gpt_forward(params, pet, tokens, num_heads, targets=None):
    # tokens: (B, T) int32
    B, T = tokens.shape
    vmem_limit = _vmem_limit_bytes()
    x = jnp.take(params["tok_emb"], tokens, axis=0)          # (B, T, E) gather (glue)
    x = x + pet[:T][None, :, :]
    # TODO(synk): dropout layers are identity (eval mode); no RNG dropout applied.
    x = run_transformer_stack(x, params["blocks"], num_heads, vmem_limit)  # all layers
    E = x.shape[-1]
    logits2d = run_head(x.reshape(B * T, E), params["lnf_g"], params["lnf_b"],
                        params["wout"], params["bout"], vmem_limit)        # (B*T, V)
    logits = logits2d.reshape(B, T, -1)
    if targets is None:
        loss = None
    else:
        tg = targets.reshape(B * T)
        lse = jax.nn.logsumexp(logits2d, axis=-1)
        loss = jnp.mean(lse - jnp.take_along_axis(logits2d, tg[:, None], axis=-1)[:, 0])
    return logits, loss


# ----------------------------------- main ---------------------------------------

if __name__ == "__main__":
    embed_dim, num_heads, num_layers = 32, 4, 2
    vocab_size, block_size, dropout = 64, 8, 0.0
    B, T = 2, 8

    key = jax.random.PRNGKey(0)
    k_params, k_tok = jax.random.split(key)
    params = init_params(k_params, embed_dim, num_heads, num_layers, vocab_size)
    pet = sinusoidal_pet(block_size, embed_dim)

    tokens = jax.random.randint(k_tok, (B, T), 0, vocab_size, dtype=jnp.int32)

    logits, loss = gpt_forward(params, pet, tokens, num_heads, targets=None)
    logits = jax.block_until_ready(logits)
    assert logits.shape == (B, T, vocab_size)
    assert jnp.all(jnp.isfinite(logits))
    print("KERNEL_OK")
</pallas_src>

<mosaic_0001>
module attributes {stable_mosaic.version = 11 : i64} {
  func.func @transformer_stack_kernel(%arg0: i32, %arg1: i32, %arg2: memref<2x8x32xf32, #tpu.memory_space<vmem>>, %arg3: memref<1x1x32xf32, #tpu.memory_space<vmem>>, %arg4: memref<1x1x32xf32, #tpu.memory_space<vmem>>, %arg5: memref<1x32x96xbf16, #tpu.memory_space<vmem>>, %arg6: memref<1x32x32xbf16, #tpu.memory_space<vmem>>, %arg7: memref<1x1x32xf32, #tpu.memory_space<vmem>>, %arg8: memref<1x1x32xf32, #tpu.memory_space<vmem>>, %arg9: memref<1x1x32xf32, #tpu.memory_space<vmem>>, %arg10: memref<1x32x128xbf16, #tpu.memory_space<vmem>>, %arg11: memref<1x1x128xf32, #tpu.memory_space<vmem>>, %arg12: memref<1x128x32xbf16, #tpu.memory_space<vmem>>, %arg13: memref<1x1x32xf32, #tpu.memory_space<vmem>>, %arg14: memref<2x8x32xf32, #tpu.memory_space<vmem>>) attributes {dimension_semantics = [#tpu.dimension_semantics<parallel>, #tpu.dimension_semantics<arbitrary>], iteration_bounds = array<i64: 1, 2>, scalar_prefetch = 0 : i64, scratch_operands = 0 : i64, tpu.core_type = #tpu.core_type<tc>, window_params = [{transform_indices = @transform_0, window_bounds = array<i64: 2, 8, 32>}, {transform_indices = @transform_1, window_bounds = array<i64: 1, 1, 32>}, {transform_indices = @transform_2, window_bounds = array<i64: 1, 1, 32>}, {transform_indices = @transform_3, window_bounds = array<i64: 1, 32, 96>}, {transform_indices = @transform_4, window_bounds = array<i64: 1, 32, 32>}, {transform_indices = @transform_5, window_bounds = array<i64: 1, 1, 32>}, {transform_indices = @transform_6, window_bounds = array<i64: 1, 1, 32>}, {transform_indices = @transform_7, window_bounds = array<i64: 1, 1, 32>}, {transform_indices = @transform_8, window_bounds = array<i64: 1, 32, 128>}, {transform_indices = @transform_9, window_bounds = array<i64: 1, 1, 128>}, {transform_indices = @transform_10, window_bounds = array<i64: 1, 128, 32>}, {transform_indices = @transform_11, window_bounds = array<i64: 1, 1, 32>}, {transform_indices = @transform_12, window_bounds = array<i64: 2, 8, 32>}]} {
    %c0_i32 = arith.constant 0 : i32
    %0 = arith.cmpi eq, %arg1, %c0_i32 : i32
    %1 = arith.extui %0 : i1 to i32
    %c0_i32_0 = arith.constant 0 : i32
    %2 = arith.cmpi ne, %1, %c0_i32_0 : i32
    scf.if %2 {
      %c0_75 = arith.constant 0 : index
      %c0_76 = arith.constant 0 : index
      %c0_77 = arith.constant 0 : index
      %191 = vector.load %arg2[%c0_75, %c0_76, %c0_77] : memref<2x8x32xf32, #tpu.memory_space<vmem>>, vector<2x8x32xf32>
      %c0_78 = arith.constant 0 : index
      %c0_79 = arith.constant 0 : index
      %c0_80 = arith.constant 0 : index
      %192 = vector.load %arg14[%c0_78, %c0_79, %c0_80] : memref<2x8x32xf32, #tpu.memory_space<vmem>>, vector<2x8x32xf32>
      tpu.vector_store %arg14[%c0_78, %c0_79, %c0_80], %191 {strides = array<i32>} : memref<2x8x32xf32, #tpu.memory_space<vmem>>, vector<2x8x32xf32>,
    } else {
    }
    %c0 = arith.constant 0 : index
    %c0_1 = arith.constant 0 : index
    %c0_2 = arith.constant 0 : index
    %3 = vector.load %arg14[%c0, %c0_1, %c0_2] : memref<2x8x32xf32, #tpu.memory_space<vmem>>, vector<2x8x32xf32>
    %4 = vector.shape_cast %3 : vector<2x8x32xf32> to vector<16x32xf32>
    %5 = tpu.iota {dimensions = array<i32: 0>} : vector<8x8xi32>
    %6 = tpu.iota {dimensions = array<i32: 1>} : vector<8x8xi32>
    %7 = arith.cmpi sge, %5, %6 : vector<8x8xi32>
    %cst = arith.constant 0.000000e+00 : f32
    %cst_3 = arith.constant -1.000000e+30 : f32
    %8 = vector.broadcast %cst : f32 to vector<8x8xf32>
    %9 = vector.broadcast %cst_3 : f32 to vector<8x8xf32>
    %10 = arith.select %7, %8, %9 : vector<8x8xi1>, vector<8x8xf32>
    %11 = vector.shape_cast %10 : vector<8x8xf32> to vector<1x8x8xf32>
    %c0_4 = arith.constant 0 : index
    %c0_5 = arith.constant 0 : index
    %c0_6 = arith.constant 0 : index
    %12 = vector.load %arg3[%c0_4, %c0_5, %c0_6] : memref<1x1x32xf32, #tpu.memory_space<vmem>>, vector<1x1x32xf32>
    %13 = vector.shape_cast %12 : vector<1x1x32xf32> to vector<1x32xf32>
    %c0_7 = arith.constant 0 : index
    %c0_8 = arith.constant 0 : index
    %c0_9 = arith.constant 0 : index
    %14 = vector.load %arg4[%c0_7, %c0_8, %c0_9] : memref<1x1x32xf32, #tpu.memory_space<vmem>>, vector<1x1x32xf32>
    %15 = vector.shape_cast %14 : vector<1x1x32xf32> to vector<1x32xf32>
    %cst_10 = arith.constant dense<0.000000e+00> : vector<16xf32>
    %16 = vector.multi_reduction <add>, %4, %cst_10 [1] : vector<16x32xf32> to vector<16xf32>
    %17 = vector.shape_cast %16 : vector<16xf32> to vector<16x1xf32>
    %cst_11 = arith.constant 3.200000e+01 : f32
    %18 = vector.broadcast %cst_11 : f32 to vector<16x1xf32>
    %19 = arith.divf %17, %18 : vector<16x1xf32>
    %20 = vector.broadcast %19 : vector<16x1xf32> to vector<16x32xf32>
    %21 = arith.subf %4, %20 : vector<16x32xf32>
    %22 = arith.mulf %21, %21 : vector<16x32xf32>
    %cst_12 = arith.constant dense<0.000000e+00> : vector<16xf32>
    %23 = vector.multi_reduction <add>, %22, %cst_12 [1] : vector<16x32xf32> to vector<16xf32>
    %24 = vector.shape_cast %23 : vector<16xf32> to vector<16x1xf32>
    %cst_13 = arith.constant 3.200000e+01 : f32
    %25 = vector.broadcast %cst_13 : f32 to vector<16x1xf32>
    %26 = arith.divf %24, %25 : vector<16x1xf32>
    %27 = vector.broadcast %19 : vector<16x1xf32> to vector<16x32xf32>
    %28 = arith.subf %4, %27 : vector<16x32xf32>
    %cst_14 = arith.constant 9.99999974E-6 : f32
    %29 = vector.broadcast %cst_14 : f32 to vector<16x1xf32>
    %30 = arith.addf %26, %29 : vector<16x1xf32>
    %31 = math.rsqrt %30 : vector<16x1xf32>
    %32 = vector.broadcast %31 : vector<16x1xf32> to vector<16x32xf32>
    %33 = arith.mulf %28, %32 : vector<16x32xf32>
    %34 = vector.broadcast %13 : vector<1x32xf32> to vector<16x32xf32>
    %35 = arith.mulf %33, %34 : vector<16x32xf32>
    %36 = vector.broadcast %15 : vector<1x32xf32> to vector<16x32xf32>
    %37 = arith.addf %35, %36 : vector<16x32xf32>
    %38 = arith.truncf %37 : vector<16x32xf32> to vector<16x32xbf16>
    %c0_15 = arith.constant 0 : index
    %c0_16 = arith.constant 0 : index
    %c0_17 = arith.constant 0 : index
    %39 = vector.load %arg5[%c0_15, %c0_16, %c0_17] : memref<1x32x96xbf16, #tpu.memory_space<vmem>>, vector<1x32x96xbf16>
    %40 = vector.shape_cast %39 : vector<1x32x96xbf16> to vector<32x96xbf16>
    %cst_18 = arith.constant dense<0.000000e+00> : vector<16x96xf32>
    %41 = tpu.matmul %38, %40, %cst_18 {dimension_numbers = #tpu.dot_dimension_numbers<[1], [0], [0], [1], [0, 0, 1, 1], [], []>} : vector<16x32xbf16>, vector<32x96xbf16>, vector<16x96xf32> -> vector<16x96xf32>
    %42 = arith.truncf %41 : vector<16x96xf32> to vector<16x96xbf16>
    %43 = vector.shape_cast %42 : vector<16x96xbf16> to vector<2x8x96xbf16>
    %c0_19 = arith.constant 0 : index
    %c0_20 = arith.constant 0 : index
    %c0_21 = arith.constant 0 : index
    %44 = vector.load %arg6[%c0_19, %c0_20, %c0_21] : memref<1x32x32xbf16, #tpu.memory_space<vmem>>, vector<1x32x32xbf16>
    %45 = vector.shape_cast %44 : vector<1x32x32xbf16> to vector<32x32xbf16>
    %cst_22 = arith.constant 0.000000e+00 : f32
    %46 = vector.broadcast %cst_22 : f32 to vector<16x32xf32>
    %47 = vector.extract_strided_slice %43 {offsets = [0, 0, 0], sizes = [2, 8, 8], strides = [1, 1, 1]} : vector<2x8x96xbf16> to vector<2x8x8xbf16>
    %48 = vector.extract_strided_slice %43 {offsets = [0, 0, 32], sizes = [2, 8, 8], strides = [1, 1, 1]} : vector<2x8x96xbf16> to vector<2x8x8xbf16>
    %49 = vector.extract_strided_slice %43 {offsets = [0, 0, 64], sizes = [2, 8, 8], strides = [1, 1, 1]} : vector<2x8x96xbf16> to vector<2x8x8xbf16>
    "tpu.trace_start"() <{level = 10 : i32, message = "btd,bsd->bts"}> : () -> ()
    %cst_23 = arith.constant dense<0.000000e+00> : vector<2x8x8xf32>
    %50 = tpu.matmul %47, %48, %cst_23 {dimension_numbers = #tpu.dot_dimension_numbers<[2], [2], [1], [1], [0, 0, 0, 1, 1, 1], [0], [0]>} : vector<2x8x8xbf16>, vector<2x8x8xbf16>, vector<2x8x8xf32> -> vector<2x8x8xf32>
    "tpu.trace_stop"() : () -> ()
    %51 = vector.broadcast %11 : vector<1x8x8xf32> to vector<2x8x8xf32>
    %52 = arith.addf %50, %51 : vector<2x8x8xf32>
    %cst_24 = arith.constant dense<0xFF800000> : vector<2x8xf32>
    %53 = vector.multi_reduction <maximumf>, %52, %cst_24 [2] : vector<2x8x8xf32> to vector<2x8xf32>
    %54 = vector.shape_cast %53 : vector<2x8xf32> to vector<2x8x1xf32>
    %55 = vector.broadcast %54 : vector<2x8x1xf32> to vector<2x8x8xf32>
    %56 = arith.subf %52, %55 : vector<2x8x8xf32>
    %57 = math.exp %56 : vector<2x8x8xf32>
    %cst_25 = arith.constant dense<0.000000e+00> : vector<2x8xf32>
    %58 = vector.multi_reduction <add>, %57, %cst_25 [2] : vector<2x8x8xf32> to vector<2x8xf32>
    %59 = vector.shape_cast %58 : vector<2x8xf32> to vector<2x8x1xf32>
    %60 = tpu.reciprocal %59 {approx = true} : vector<2x8x1xf32> -> vector<2x8x1xf32>
    %61 = vector.broadcast %60 : vector<2x8x1xf32> to vector<2x8x8xf32>
    %62 = arith.mulf %57, %61 : vector<2x8x8xf32>
    %63 = arith.truncf %62 : vector<2x8x8xf32> to vector<2x8x8xbf16>
    "tpu.trace_start"() <{level = 10 : i32, message = "bts,bsd->btd"}> : () -> ()
    %cst_26 = arith.constant dense<0.000000e+00> : vector<2x8x8xf32>
    %64 = tpu.matmul %63, %49, %cst_26 {dimension_numbers = #tpu.dot_dimension_numbers<[2], [1], [1], [2], [0, 0, 0, 1, 1, 2], [0], [0]>} : vector<2x8x8xbf16>, vector<2x8x8xbf16>, vector<2x8x8xf32> -> vector<2x8x8xf32>
    "tpu.trace_stop"() : () -> ()
    %65 = arith.truncf %64 : vector<2x8x8xf32> to vector<2x8x8xbf16>
    %66 = vector.shape_cast %65 : vector<2x8x8xbf16> to vector<16x8xbf16>
    %67 = vector.extract_strided_slice %45 {offsets = [0, 0], sizes = [8, 32], strides = [1, 1]} : vector<32x32xbf16> to vector<8x32xbf16>
    %cst_27 = arith.constant dense<0.000000e+00> : vector<16x32xf32>
    %68 = tpu.matmul %66, %67, %cst_27 {dimension_numbers = #tpu.dot_dimension_numbers<[1], [0], [0], [1], [0, 0, 1, 1], [], []>} : vector<16x8xbf16>, vector<8x32xbf16>, vector<16x32xf32> -> vector<16x32xf32>
    %69 = arith.addf %46, %68 : vector<16x32xf32>
    %70 = vector.extract_strided_slice %43 {offsets = [0, 0, 8], sizes = [2, 8, 8], strides = [1, 1, 1]} : vector<2x8x96xbf16> to vector<2x8x8xbf16>
    %71 = vector.extract_strided_slice %43 {offsets = [0, 0, 40], sizes = [2, 8, 8], strides = [1, 1, 1]} : vector<2x8x96xbf16> to vector<2x8x8xbf16>
    %72 = vector.extract_strided_slice %43 {offsets = [0, 0, 72], sizes = [2, 8, 8], strides = [1, 1, 1]} : vector<2x8x96xbf16> to vector<2x8x8xbf16>
    "tpu.trace_start"() <{level = 10 : i32, message = "btd,bsd->bts"}> : () -> ()
    %cst_28 = arith.constant dense<0.000000e+00> : vector<2x8x8xf32>
    %73 = tpu.matmul %70, %71, %cst_28 {dimension_numbers = #tpu.dot_dimension_numbers<[2], [2], [1], [1], [0, 0, 0, 1, 1, 1], [0], [0]>} : vector<2x8x8xbf16>, vector<2x8x8xbf16>, vector<2x8x8xf32> -> vector<2x8x8xf32>
    "tpu.trace_stop"() : () -> ()
    %74 = vector.broadcast %11 : vector<1x8x8xf32> to vector<2x8x8xf32>
    %75 = arith.addf %73, %74 : vector<2x8x8xf32>
    %cst_29 = arith.constant dense<0xFF800000> : vector<2x8xf32>
    %76 = vector.multi_reduction <maximumf>, %75, %cst_29 [2] : vector<2x8x8xf32> to vector<2x8xf32>
    %77 = vector.shape_cast %76 : vector<2x8xf32> to vector<2x8x1xf32>
    %78 = vector.broadcast %77 : vector<2x8x1xf32> to vector<2x8x8xf32>
    %79 = arith.subf %75, %78 : vector<2x8x8xf32>
    %80 = math.exp %79 : vector<2x8x8xf32>
    %cst_30 = arith.constant dense<0.000000e+00> : vector<2x8xf32>
    %81 = vector.multi_reduction <add>, %80, %cst_30 [2] : vector<2x8x8xf32> to vector<2x8xf32>
    %82 = vector.shape_cast %81 : vector<2x8xf32> to vector<2x8x1xf32>
    %83 = tpu.reciprocal %82 {approx = true} : vector<2x8x1xf32> -> vector<2x8x1xf32>
    %84 = vector.broadcast %83 : vector<2x8x1xf32> to vector<2x8x8xf32>
    %85 = arith.mulf %80, %84 : vector<2x8x8xf32>
    %86 = arith.truncf %85 : vector<2x8x8xf32> to vector<2x8x8xbf16>
    "tpu.trace_start"() <{level = 10 : i32, message = "bts,bsd->btd"}> : () -> ()
    %cst_31 = arith.constant dense<0.000000e+00> : vector<2x8x8xf32>
    %87 = tpu.matmul %86, %72, %cst_31 {dimension_numbers = #tpu.dot_dimension_numbers<[2], [1], [1], [2], [0, 0, 0, 1, 1, 2], [0], [0]>} : vector<2x8x8xbf16>, vector<2x8x8xbf16>, vector<2x8x8xf32> -> vector<2x8x8xf32>
    "tpu.trace_stop"() : () -> ()
    %88 = arith.truncf %87 : vector<2x8x8xf32> to vector<2x8x8xbf16>
    %89 = vector.shape_cast %88 : vector<2x8x8xbf16> to vector<16x8xbf16>
    %90 = vector.extract_strided_slice %45 {offsets = [8, 0], sizes = [8, 32], strides = [1, 1]} : vector<32x32xbf16> to vector<8x32xbf16>
    %cst_32 = arith.constant dense<0.000000e+00> : vector<16x32xf32>
    %91 = tpu.matmul %89, %90, %cst_32 {dimension_numbers = #tpu.dot_dimension_numbers<[1], [0], [0], [1], [0, 0, 1, 1], [], []>} : vector<16x8xbf16>, vector<8x32xbf16>, vector<16x32xf32> -> vector<16x32xf32>
    %92 = arith.addf %69, %91 : vector<16x32xf32>
    %93 = vector.extract_strided_slice %43 {offsets = [0, 0, 16], sizes = [2, 8, 8], strides = [1, 1, 1]} : vector<2x8x96xbf16> to vector<2x8x8xbf16>
    %94 = vector.extract_strided_slice %43 {offsets = [0, 0, 48], sizes = [2, 8, 8], strides = [1, 1, 1]} : vector<2x8x96xbf16> to vector<2x8x8xbf16>
    %95 = vector.extract_strided_slice %43 {offsets = [0, 0, 80], sizes = [2, 8, 8], strides = [1, 1, 1]} : vector<2x8x96xbf16> to vector<2x8x8xbf16>
    "tpu.trace_start"() <{level = 10 : i32, message = "btd,bsd->bts"}> : () -> ()
    %cst_33 = arith.constant dense<0.000000e+00> : vector<2x8x8xf32>
    %96 = tpu.matmul %93, %94, %cst_33 {dimension_numbers = #tpu.dot_dimension_numbers<[2], [2], [1], [1], [0, 0, 0, 1, 1, 1], [0], [0]>} : vector<2x8x8xbf16>, vector<2x8x8xbf16>, vector<2x8x8xf32> -> vector<2x8x8xf32>
    "tpu.trace_stop"() : () -> ()
    %97 = vector.broadcast %11 : vector<1x8x8xf32> to vector<2x8x8xf32>
    %98 = arith.addf %96, %97 : vector<2x8x8xf32>
    %cst_34 = arith.constant dense<0xFF800000> : vector<2x8xf32>
    %99 = vector.multi_reduction <maximumf>, %98, %cst_34 [2] : vector<2x8x8xf32> to vector<2x8xf32>
    %100 = vector.shape_cast %99 : vector<2x8xf32> to vector<2x8x1xf32>
    %101 = vector.broadcast %100 : vector<2x8x1xf32> to vector<2x8x8xf32>
    %102 = arith.subf %98, %101 : vector<2x8x8xf32>
    %103 = math.exp %102 : vector<2x8x8xf32>
    %cst_35 = arith.constant dense<0.000000e+00> : vector<2x8xf32>
    %104 = vector.multi_reduction <add>, %103, %cst_35 [2] : vector<2x8x8xf32> to vector<2x8xf32>
    %105 = vector.shape_cast %104 : vector<2x8xf32> to vector<2x8x1xf32>
    %106 = tpu.reciprocal %105 {approx = true} : vector<2x8x1xf32> -> vector<2x8x1xf32>
    %107 = vector.broadcast %106 : vector<2x8x1xf32> to vector<2x8x8xf32>
    %108 = arith.mulf %103, %107 : vector<2x8x8xf32>
    %109 = arith.truncf %108 : vector<2x8x8xf32> to vector<2x8x8xbf16>
    "tpu.trace_start"() <{level = 10 : i32, message = "bts,bsd->btd"}> : () -> ()
    %cst_36 = arith.constant dense<0.000000e+00> : vector<2x8x8xf32>
    %110 = tpu.matmul %109, %95, %cst_36 {dimension_numbers = #tpu.dot_dimension_numbers<[2], [1], [1], [2], [0, 0, 0, 1, 1, 2], [0], [0]>} : vector<2x8x8xbf16>, vector<2x8x8xbf16>, vector<2x8x8xf32> -> vector<2x8x8xf32>
    "tpu.trace_stop"() : () -> ()
    %111 = arith.truncf %110 : vector<2x8x8xf32> to vector<2x8x8xbf16>
    %112 = vector.shape_cast %111 : vector<2x8x8xbf16> to vector<16x8xbf16>
    %113 = vector.extract_strided_slice %45 {offsets = [16, 0], sizes = [8, 32], strides = [1, 1]} : vector<32x32xbf16> to vector<8x32xbf16>
    %cst_37 = arith.constant dense<0.000000e+00> : vector<16x32xf32>
    %114 = tpu.matmul %112, %113, %cst_37 {dimension_numbers = #tpu.dot_dimension_numbers<[1], [0], [0], [1], [0, 0, 1, 1], [], []>} : vector<16x8xbf16>, vector<8x32xbf16>, vector<16x32xf32> -> vector<16x32xf32>
    %115 = arith.addf %92, %114 : vector<16x32xf32>
    %116 = vector.extract_strided_slice %43 {offsets = [0, 0, 24], sizes = [2, 8, 8], strides = [1, 1, 1]} : vector<2x8x96xbf16> to vector<2x8x8xbf16>
    %117 = vector.extract_strided_slice %43 {offsets = [0, 0, 56], sizes = [2, 8, 8], strides = [1, 1, 1]} : vector<2x8x96xbf16> to vector<2x8x8xbf16>
    %118 = vector.extract_strided_slice %43 {offsets = [0, 0, 88], sizes = [2, 8, 8], strides = [1, 1, 1]} : vector<2x8x96xbf16> to vector<2x8x8xbf16>
    "tpu.trace_start"() <{level = 10 : i32, message = "btd,bsd->bts"}> : () -> ()
    %cst_38 = arith.constant dense<0.000000e+00> : vector<2x8x8xf32>
    %119 = tpu.matmul %116, %117, %cst_38 {dimension_numbers = #tpu.dot_dimension_numbers<[2], [2], [1], [1], [0, 0, 0, 1, 1, 1], [0], [0]>} : vector<2x8x8xbf16>, vector<2x8x8xbf16>, vector<2x8x8xf32> -> vector<2x8x8xf32>
    "tpu.trace_stop"() : () -> ()
    %120 = vector.broadcast %11 : vector<1x8x8xf32> to vector<2x8x8xf32>
    %121 = arith.addf %119, %120 : vector<2x8x8xf32>
    %cst_39 = arith.constant dense<0xFF800000> : vector<2x8xf32>
    %122 = vector.multi_reduction <maximumf>, %121, %cst_39 [2] : vector<2x8x8xf32> to vector<2x8xf32>
    %123 = vector.shape_cast %122 : vector<2x8xf32> to vector<2x8x1xf32>
    %124 = vector.broadcast %123 : vector<2x8x1xf32> to vector<2x8x8xf32>
    %125 = arith.subf %121, %124 : vector<2x8x8xf32>
    %126 = math.exp %125 : vector<2x8x8xf32>
    %cst_40 = arith.constant dense<0.000000e+00> : vector<2x8xf32>
    %127 = vector.multi_reduction <add>, %126, %cst_40 [2] : vector<2x8x8xf32> to vector<2x8xf32>
    %128 = vector.shape_cast %127 : vector<2x8xf32> to vector<2x8x1xf32>
    %129 = tpu.reciprocal %128 {approx = true} : vector<2x8x1xf32> -> vector<2x8x1xf32>
    %130 = vector.broadcast %129 : vector<2x8x1xf32> to vector<2x8x8xf32>
    %131 = arith.mulf %126, %130 : vector<2x8x8xf32>
    %132 = arith.truncf %131 : vector<2x8x8xf32> to vector<2x8x8xbf16>
    "tpu.trace_start"() <{level = 10 : i32, message = "bts,bsd->btd"}> : () -> ()
    %cst_41 = arith.constant dense<0.000000e+00> : vector<2x8x8xf32>
    %133 = tpu.matmul %132, %118, %cst_41 {dimension_numbers = #tpu.dot_dimension_numbers<[2], [1], [1], [2], [0, 0, 0, 1, 1, 2], [0], [0]>} : vector<2x8x8xbf16>, vector<2x8x8xbf16>, vector<2x8x8xf32> -> vector<2x8x8xf32>
    "tpu.trace_stop"() : () -> ()
    %134 = arith.truncf %133 : vector<2x8x8xf32> to vector<2x8x8xbf16>
    %135 = vector.shape_cast %134 : vector<2x8x8xbf16> to vector<16x8xbf16>
    %136 = vector.extract_strided_slice %45 {offsets = [24, 0], sizes = [8, 32], strides = [1, 1]} : vector<32x32xbf16> to vector<8x32xbf16>
    %cst_42 = arith.constant dense<0.000000e+00> : vector<16x32xf32>
    %137 = tpu.matmul %135, %136, %cst_42 {dimension_numbers = #tpu.dot_dimension_numbers<[1], [0], [0], [1], [0, 0, 1, 1], [], []>} : vector<16x8xbf16>, vector<8x32xbf16>, vector<16x32xf32> -> vector<16x32xf32>
    %138 = arith.addf %115, %137 : vector<16x32xf32>
    %139 = arith.addf %4, %138 : vector<16x32xf32>
    %c0_43 = arith.constant 0 : index
    %c0_44 = arith.constant 0 : index
    %c0_45 = arith.constant 0 : index
    %140 = vector.load %arg7[%c0_43, %c0_44, %c0_45] : memref<1x1x32xf32, #tpu.memory_space<vmem>>, vector<1x1x32xf32>
    %141 = vector.shape_cast %140 : vector<1x1x32xf32> to vector<1x32xf32>
    %142 = vector.broadcast %141 : vector<1x32xf32> to vector<16x32xf32>
    %143 = arith.addf %139, %142 : vector<16x32xf32>
    %c0_46 = arith.constant 0 : index
    %c0_47 = arith.constant 0 : index
    %c0_48 = arith.constant 0 : index
    %144 = vector.load %arg8[%c0_46, %c0_47, %c0_48] : memref<1x1x32xf32, #tpu.memory_space<vmem>>, vector<1x1x32xf32>
    %145 = vector.shape_cast %144 : vector<1x1x32xf32> to vector<1x32xf32>
    %c0_49 = arith.constant 0 : index
    %c0_50 = arith.constant 0 : index
    %c0_51 = arith.constant 0 : index
    %146 = vector.load %arg9[%c0_49, %c0_50, %c0_51] : memref<1x1x32xf32, #tpu.memory_space<vmem>>, vector<1x1x32xf32>
    %147 = vector.shape_cast %146 : vector<1x1x32xf32> to vector<1x32xf32>
    %cst_52 = arith.constant dense<0.000000e+00> : vector<16xf32>
    %148 = vector.multi_reduction <add>, %143, %cst_52 [1] : vector<16x32xf32> to vector<16xf32>
    %149 = vector.shape_cast %148 : vector<16xf32> to vector<16x1xf32>
    %cst_53 = arith.constant 3.200000e+01 : f32
    %150 = vector.broadcast %cst_53 : f32 to vector<16x1xf32>
    %151 = arith.divf %149, %150 : vector<16x1xf32>
    %152 = vector.broadcast %151 : vector<16x1xf32> to vector<16x32xf32>
    %153 = arith.subf %143, %152 : vector<16x32xf32>
    %154 = arith.mulf %153, %153 : vector<16x32xf32>
    %cst_54 = arith.constant dense<0.000000e+00> : vector<16xf32>
    %155 = vector.multi_reduction <add>, %154, %cst_54 [1] : vector<16x32xf32> to vector<16xf32>
    %156 = vector.shape_cast %155 : vector<16xf32> to vector<16x1xf32>
    %cst_55 = arith.constant 3.200000e+01 : f32
    %157 = vector.broadcast %cst_55 : f32 to vector<16x1xf32>
    %158 = arith.divf %156, %157 : vector<16x1xf32>
    %159 = vector.broadcast %151 : vector<16x1xf32> to vector<16x32xf32>
    %160 = arith.subf %143, %159 : vector<16x32xf32>
    %cst_56 = arith.constant 9.99999974E-6 : f32
    %161 = vector.broadcast %cst_56 : f32 to vector<16x1xf32>
    %162 = arith.addf %158, %161 : vector<16x1xf32>
    %163 = math.rsqrt %162 : vector<16x1xf32>
    %164 = vector.broadcast %163 : vector<16x1xf32> to vector<16x32xf32>
    %165 = arith.mulf %160, %164 : vector<16x32xf32>
    %166 = vector.broadcast %145 : vector<1x32xf32> to vector<16x32xf32>
    %167 = arith.mulf %165, %166 : vector<16x32xf32>
    %168 = vector.broadcast %147 : vector<1x32xf32> to vector<16x32xf32>
    %169 = arith.addf %167, %168 : vector<16x32xf32>
    %170 = arith.truncf %169 : vector<16x32xf32> to vector<16x32xbf16>
    %c0_57 = arith.constant 0 : index
    %c0_58 = arith.constant 0 : index
    %c0_59 = arith.constant 0 : index
    %171 = vector.load %arg10[%c0_57, %c0_58, %c0_59] : memref<1x32x128xbf16, #tpu.memory_space<vmem>>, vector<1x32x128xbf16>
    %172 = vector.shape_cast %171 : vector<1x32x128xbf16> to vector<32x128xbf16>
    %cst_60 = arith.constant dense<0.000000e+00> : vector<16x128xf32>
    %173 = tpu.matmul %170, %172, %cst_60 {dimension_numbers = #tpu.dot_dimension_numbers<[1], [0], [0], [1], [0, 0, 1, 1], [], []>} : vector<16x32xbf16>, vector<32x128xbf16>, vector<16x128xf32> -> vector<16x128xf32>
    %c0_61 = arith.constant 0 : index
    %c0_62 = arith.constant 0 : index
    %c0_63 = arith.constant 0 : index
    %174 = vector.load %arg11[%c0_61, %c0_62, %c0_63] : memref<1x1x128xf32, #tpu.memory_space<vmem>>, vector<1x1x128xf32>
    %175 = vector.shape_cast %174 : vector<1x1x128xf32> to vector<1x128xf32>
    %176 = vector.broadcast %175 : vector<1x128xf32> to vector<16x128xf32>
    %177 = arith.addf %173, %176 : vector<16x128xf32>
    %cst_64 = arith.constant 0.000000e+00 : f32
    %178 = vector.broadcast %cst_64 : f32 to vector<16x128xf32>
    %179 = arith.maximumf %177, %178 : vector<16x128xf32>
    %180 = arith.truncf %179 : vector<16x128xf32> to vector<16x128xbf16>
    %c0_65 = arith.constant 0 : index
    %c0_66 = arith.constant 0 : index
    %c0_67 = arith.constant 0 : index
    %181 = vector.load %arg12[%c0_65, %c0_66, %c0_67] : memref<1x128x32xbf16, #tpu.memory_space<vmem>>, vector<1x128x32xbf16>
    %182 = vector.shape_cast %181 : vector<1x128x32xbf16> to vector<128x32xbf16>
    %cst_68 = arith.constant dense<0.000000e+00> : vector<16x32xf32>
    %183 = tpu.matmul %180, %182, %cst_68 {dimension_numbers = #tpu.dot_dimension_numbers<[1], [0], [0], [1], [0, 0, 1, 1], [], []>} : vector<16x128xbf16>, vector<128x32xbf16>, vector<16x32xf32> -> vector<16x32xf32>
    %c0_69 = arith.constant 0 : index
    %c0_70 = arith.constant 0 : index
    %c0_71 = arith.constant 0 : index
    %184 = vector.load %arg13[%c0_69, %c0_70, %c0_71] : memref<1x1x32xf32, #tpu.memory_space<vmem>>, vector<1x1x32xf32>
    %185 = vector.shape_cast %184 : vector<1x1x32xf32> to vector<1x32xf32>
    %186 = vector.broadcast %185 : vector<1x32xf32> to vector<16x32xf32>
    %187 = arith.addf %183, %186 : vector<16x32xf32>
    %188 = arith.addf %143, %187 : vector<16x32xf32>
    %189 = vector.shape_cast %188 : vector<16x32xf32> to vector<2x8x32xf32>
    %c0_72 = arith.constant 0 : index
    %c0_73 = arith.constant 0 : index
    %c0_74 = arith.constant 0 : index
    %190 = vector.load %arg14[%c0_72, %c0_73, %c0_74] : memref<2x8x32xf32, #tpu.memory_space<vmem>>, vector<2x8x32xf32>
    tpu.vector_store %arg14[%c0_72, %c0_73, %c0_74], %189 {strides = array<i32>} : memref<2x8x32xf32, #tpu.memory_space<vmem>>, vector<2x8x32xf32>,
    return
  }
  func.func @transform_0(%arg0: i32, %arg1: i32) -> (i32, i32, i32) {
    %c0_i32 = arith.constant 0 : i32
    %c0_i32_0 = arith.constant 0 : i32
    %c0_i32_1 = arith.constant 0 : i32
    return %arg0, %c0_i32, %c0_i32_0 : i32, i32, i32
  }
  func.func @transform_1(%arg0: i32, %arg1: i32) -> (i32, i32, i32) {
    %c0_i32 = arith.constant 0 : i32
    %c0_i32_0 = arith.constant 0 : i32
    %c0_i32_1 = arith.constant 0 : i32
    return %arg1, %c0_i32, %c0_i32_0 : i32, i32, i32
  }
  func.func @transform_2(%arg0: i32, %arg1: i32) -> (i32, i32, i32) {
    %c0_i32 = arith.constant 0 : i32
    %c0_i32_0 = arith.constant 0 : i32
    %c0_i32_1 = arith.constant 0 : i32
    return %arg1, %c0_i32, %c0_i32_0 : i32, i32, i32
  }
  func.func @transform_3(%arg0: i32, %arg1: i32) -> (i32, i32, i32) {
    %c0_i32 = arith.constant 0 : i32
    %c0_i32_0 = arith.constant 0 : i32
    %c0_i32_1 = arith.constant 0 : i32
    return %arg1, %c0_i32, %c0_i32_0 : i32, i32, i32
  }
  func.func @transform_4(%arg0: i32, %arg1: i32) -> (i32, i32, i32) {
    %c0_i32 = arith.constant 0 : i32
    %c0_i32_0 = arith.constant 0 : i32
    %c0_i32_1 = arith.constant 0 : i32
    return %arg1, %c0_i32, %c0_i32_0 : i32, i32, i32
  }
  func.func @transform_5(%arg0: i32, %arg1: i32) -> (i32, i32, i32) {
    %c0_i32 = arith.constant 0 : i32
    %c0_i32_0 = arith.constant 0 : i32
    %c0_i32_1 = arith.constant 0 : i32
    return %arg1, %c0_i32, %c0_i32_0 : i32, i32, i32
  }
  func.func @transform_6(%arg0: i32, %arg1: i32) -> (i32, i32, i32) {
    %c0_i32 = arith.constant 0 : i32
    %c0_i32_0 = arith.constant 0 : i32
    %c0_i32_1 = arith.constant 0 : i32
    return %arg1, %c0_i32, %c0_i32_0 : i32, i32, i32
  }
  func.func @transform_7(%arg0: i32, %arg1: i32) -> (i32, i32, i32) {
    %c0_i32 = arith.constant 0 : i32
    %c0_i32_0 = arith.constant 0 : i32
    %c0_i32_1 = arith.constant 0 : i32
    return %arg1, %c0_i32, %c0_i32_0 : i32, i32, i32
  }
  func.func @transform_8(%arg0: i32, %arg1: i32) -> (i32, i32, i32) {
    %c0_i32 = arith.constant 0 : i32
    %c0_i32_0 = arith.constant 0 : i32
    %c0_i32_1 = arith.constant 0 : i32
    return %arg1, %c0_i32, %c0_i32_0 : i32, i32, i32
  }
  func.func @transform_9(%arg0: i32, %arg1: i32) -> (i32, i32, i32) {
    %c0_i32 = arith.constant 0 : i32
    %c0_i32_0 = arith.constant 0 : i32
    %c0_i32_1 = arith.constant 0 : i32
    return %arg1, %c0_i32, %c0_i32_0 : i32, i32, i32
  }
  func.func @transform_10(%arg0: i32, %arg1: i32) -> (i32, i32, i32) {
    %c0_i32 = arith.constant 0 : i32
    %c0_i32_0 = arith.constant 0 : i32
    %c0_i32_1 = arith.constant 0 : i32
    return %arg1, %c0_i32, %c0_i32_0 : i32, i32, i32
  }
  func.func @transform_11(%arg0: i32, %arg1: i32) -> (i32, i32, i32) {
    %c0_i32 = arith.constant 0 : i32
    %c0_i32_0 = arith.constant 0 : i32
    %c0_i32_1 = arith.constant 0 : i32
    return %arg1, %c0_i32, %c0_i32_0 : i32, i32, i32
  }
  func.func @transform_12(%arg0: i32, %arg1: i32) -> (i32, i32, i32) {
    %c0_i32 = arith.constant 0 : i32
    %c0_i32_0 = arith.constant 0 : i32
    %c0_i32_1 = arith.constant 0 : i32
    return %arg0, %c0_i32, %c0_i32_0 : i32, i32, i32
  }
}

</mosaic_0001>

<bundles_post_ra>
// kernel: tpu_custom_call.1
= control target key start
LH: loop header
LB: loop body
LE: loop exit
PB: predicated region body
PF: predicated region fallthrough
CT: control target
= control target key end

     0   :  { %s3158_s0 = inlined_call_operand.vmem [shape: f32[2,8,32], index: 0, kind: input, shape index: {}]   ;;  %s3159_s1 = inlined_call_operand.vmem [shape: f32[2,1,32], index: 1, kind: input, shape index: {}]   ;;  %s3160_s2 = inlined_call_operand.vmem [shape: f32[2,1,32], index: 2, kind: input, shape index: {}]   ;;  %s3161_s3 = inlined_call_operand.vmem [shape: bf16[2,32,96], index: 3, kind: input, shape index: {}]   ;;  %s3162_s4 = inlined_call_operand.vmem [shape: bf16[2,32,32], index: 4, kind: input, shape index: {}]   ;;  %s3163_s5 = inlined_call_operand.vmem [shape: f32[2,1,32], index: 5, kind: input, shape index: {}]   ;;  %s3164_s6 = inlined_call_operand.vmem [shape: f32[2,1,32], index: 6, kind: input, shape index: {}]   ;;  %s3165_s7 = inlined_call_operand.vmem [shape: f32[2,1,32], index: 7, kind: input, shape index: {}]   ;;  %s3166_s8 = inlined_call_operand.vmem [shape: bf16[2,32,128], index: 8, kind: input, shape index: {}]   ;;  %s3167_s9 = inlined_call_operand.vmem [shape: f32[2,1,128], index: 9, kind: input, shape index: {}]   ;;  %s3168_s10 = inlined_call_operand.vmem [shape: bf16[2,128,32], index: 10, kind: input, shape index: {}]   ;;  %s3169_s11 = inlined_call_operand.vmem [shape: f32[2,1,32], index: 11, kind: input, shape index: {}]   ;;  %s3170_s12 = inlined_call_operand.hbm [shape: f32[2,8,32], index: 12, kind: output, shape index: {}]  }
   0x1   :  { %3174 = sst [smem:[#allocation8_spill]] %s3161_s3 }
   0x2   :  { %3175 = sst [smem:[#allocation9_spill]] %s3162_s4 }
   0x3   :  { %3176 = sst [smem:[#allocation10_spill]] %s3170_s12 }
   0x4   :  { %17 = vsyncpa [#allocation3], 0  ;;  %s2770_s21 = smov 0   ;;  %s2772_s22 = smov 0  }
   0x5   :  { %s2774_s23 = smov 0  }
   0x6 LB: > { %3177 = sst [smem:[#allocation5_spill]] %s2682_s22  ;;  %s32_s25 = sadd.s32 1, %s2682_s22  ;;  %s2686_s23 = sphi %s2774_s23, %s23_s23   ;;  %s2682_s22 = sphi %s2772_s22, %s3192_s22   ;;  %s2678_s21 = sphi %s2770_s21, %s3191_s21  }
   0x7   : > { %3178 = sst [smem:[#allocation6_spill]] %s2686_s23  ;;  %p33_p0 = scmp.ge.s32.totalorder %s32_s25, 2 }
   0x8   : > { %p2253_p1 = scmp.ge.s32.totalorder %s2686_s23, 1  ;;  %p472_p2 = scmp.lt.s32.totalorder %s2686_s23, 3 }
   0x9   : > { %s3194_s25 = smov (%p33_p0, %s32_s25), 0 }
   0xa   : > { %3179 = sst [smem:[#allocation7_spill]] %s3194_s25  ;;  %p473_p3 = pnand %p2253_p1, %p472_p2 }
   0xb   : > { %p556_p4 = scmp.lt.s32.totalorder (!%p473_p3), %s2678_s21, 1  ;;  %s3180_s3 = sld [smem:[#allocation8_spill]] (!%p473_p3) }
   0xc   : > { %476 = sbr.rel (%p473_p3) target bundleno = 4474 (0x117a), region = 68  ;;  %s3181_s4 = sld [smem:[#allocation9_spill]] (!%p473_p3) }
   0xd   : > { %p2262_p5 = scmp.ne.s32.totalorder (!%p473_p3), %s2678_s21, 0 }
  0x13   : > { %s2789_s26 = scalar_select %p556_p4, %s2678_s21, 1 }
  0x14   : > { %602 = sbr.rel (%p2262_p5) target bundleno = 27 (0x1b), region = 72  ;;  %v603_v0 = vld [vmem:[%s3158_s0] sm:$0xff] (!%p2262_p5)  ;;  %vm605_vm0 = vcmask (!%p2262_p5), 261120   ;;  %v604_v1 = vld [vmem:[%s3158_s0 + $0x8] sm:$0xff] (!%p2262_p5) }
  0x15   : > { %s2314_s15 = sshll.u32 %s2789_s26, 4  ;;  %s580_s12 = scalar_lea.vmem %s3165_s7, %s2789_s26  ;;  %606 = vst.msk [vmem:[#allocation2] sm:$0xff] (!%p2262_p5), %vm605_vm0, %v603_v0  ;;  %607 = vst.msk [vmem:[#allocation2 + $0x8] sm:$0xff] (!%p2262_p5), %vm605_vm0, %v604_v1 }
  0x16   : > { %s2807_s27 = scalar_lea.vmem %s3180_s3, %s2314_s15  ;;  %s2812_s25 = scalar_lea.vmem %s3181_s4, %s2314_s15 }
  0x17   : > { %s2825_s18 = scalar_lea.vmem %s3166_s8, %s2314_s15  ;;  %s588_s3 = scalar_lea.vmem %s3167_s9, %s2789_s26 }
  0x18   : > { %s2317_s24 = sshll.u32 %s2789_s26, 6  ;;  %s596_s23 = scalar_lea.vmem %s3169_s11, %s2789_s26 }
  0x19   : > { %s2839_s30 = scalar_lea.vmem %s3168_s10, %s2317_s24 }
  0x1b PF: > { %vm618_vm1 = vcmask 261120   ;;  %v2582_v16 = vld [vmem:[%s2807_s27] sm:$0xff]   ;;  %v2688_v17 = vmov 0.0   ;;  %v2583_v18 = vld [vmem:[%s2807_s27 + $0x8] sm:$0xff]   ;;  %vm2689_vm2 = vmmov 0   ;;  %s3182_s27 = scalar_lea.vmem %s3159_s1, %s2789_s26  ;;  %s3183_s20 = scalar_lea.vmem %s3160_s2, %s2789_s26  ;;  %vm735_vm3 = vcmask 64512  }
  0x1c   : > { %v2847_v2 = vld [vmem:[#allocation2] sm:$0xff]  ;;  %v2849_v3 = vld [vmem:[#allocation2 + $0x8] sm:$0xff]  ;;  %2379 = vmatprep.subr.bf16.mxu1 %v2688_v17  ;;  %2405 = vmatprep.subr.bf16.mxu0 %v2688_v17  ;;  %s2690_s24 = smov 96   ;;  %v610_v46 = vlaneseq  ;;  %v2691_v49 = vmov -1e+30   ;;  %s2692_s28 = smov 64  }
  0x1d   : > { %v619_v4 = vsel %vm618_vm1, %v2847_v2, 0.0  ;;  %v622_v5 = vsel %vm618_vm1, %v2849_v3, 0.0  ;;  %2380 = vmatpush3.bf16.msra.mxu1 %v2582_v16  ;;  %2383 = vmatprep.mubr.msk.bf16.mxu1 %vm2689_vm2, %v2688_v17  ;;  %v2263_v27 = vld [vmem:[%s3182_s27] ss:$0 sm:$0xff]  ;;  %s2693_s22 = smov 88   ;;  %vm859_vm5 = vcmask 1043456   ;;  %s3184_s19 = scalar_lea.vmem %s3163_s5, %s2789_s26 }
  0x1e   : > { %620 = vadd.xlane.f32.xlu0 %v619_v4  ;;  %2381 = vmatprep.subr.bf16.mxu1 %v2688_v17  ;;  %v2264_v31 = vld [vmem:[%s3183_s20] ss:$0 sm:$0xff]  ;;  %v611_v47 = vshrl.u32 %v610_v46, 7  ;;  %v613_v48 = vand.u32 127, %v610_v46  ;;  %s2694_s29 = smov 120   ;;  %s2695_s14 = smov 56  }
  0x1f   : > { %2407 = vmatprep.mubr.msk.bf16.mxu0 %vm2689_vm2, %v2688_v17  ;;  %s2696_s13 = smov 80   ;;  %s2697_s15 = smov 112  }
  0x20   : > { %vm614_vm4 = vcmp.ge.s32.totalorder %v611_v47, %v613_v48  ;;  %s2698_s16 = smov 48   ;;  %s2699_s4 = smov 72  }
  0x21   : > { %2382 = vmatpush3.bf16.msra.mxu1 %v2583_v18  ;;  %v2900_v50 = vsel %vm614_vm4, 0.0, %v2691_v49  ;;  %s2700_s21 = smov 104   ;;  %s2701_s27 = smov 40  }
  0x22   : > { %623 = vadd.xlane.f32.xlu0 %v622_v5  ;;  %2387 = vmatprep.subr.bf16.mxu1 %v2688_v17 }
  0xab   : > { %v621_v6 = vpop.xlane.xlu0 %620 }
  0xac   : > { %v626_v7 = vmul.f32 0.03125, %v621_v6 }
  0xae   : > { %v628_v8 = vsub.f32 %v2847_v2, %v626_v7 }
  0xaf   : > { %v624_v9 = vpop.xlane.xlu0 %623 }
  0xb0   : > { %v627_v10 = vmul.f32 0.03125, %v624_v9  ;;  %v630_v11 = vmul.f32 %v628_v8, %v628_v8 }
  0xb2   : > { %v629_v12 = vsub.f32 %v2849_v3, %v627_v10  ;;  %v632_v13 = vsel %vm618_vm1, %v630_v11, 0.0 }
  0xb3   : > { %633 = vadd.xlane.f32.xlu1 %v632_v13 }
  0xb4   : > { %v631_v14 = vmul.f32 %v629_v12, %v629_v12 }
  0xb6   : > { %v635_v15 = vsel %vm618_vm1, %v631_v14, 0.0 }
  0xb7   : > { %636 = vadd.xlane.f32.xlu1 %v635_v15 }
 0x140   : > { %v634_v19 = vpop.xlane.xlu1 %633 }
 0x141   : > { %v638_v20 = vmul.f32 0.03125, %v634_v19 }
 0x143   : > { %v640_v21 = vadd.f32 1e-05, %v638_v20 }
 0x144   : > { %v637_v22 = vpop.xlane.xlu1 %636 }
 0x145   : > { %2594 = vrsqrt.f32 %v640_v21  ;;  %v639_v23 = vmul.f32 0.03125, %v637_v22 }
 0x147   : > { %v641_v24 = vadd.f32 1e-05, %v639_v23 }
 0x149   : > { %2596 = vrsqrt.f32 %v641_v24 }
 0x14f   : > { %v2595_v25 = vpop.eup %2594 }
 0x150   : > { %v644_v26 = vmul.f32 %v2595_v25, %v628_v8 }
 0x152   : > { %v652_v30 = vmul.f32 %v2263_v27, %v644_v26 }
 0x153   : > { %v2597_v28 = vpop.eup %2596 }
 0x154   : > { %v645_v29 = vmul.f32 %v2597_v28, %v629_v12  ;;  %v660_v33 = vadd.f32 %v2264_v31, %v652_v30 }
 0x156   : > { %v653_v32 = vmul.f32 %v2263_v27, %v645_v29 }
 0x158   : > { %v661_v34 = vadd.f32 %v2264_v31, %v653_v32 }
 0x15a   : > { %v662_v35 = vpack.c.bf16 %v661_v34, %v660_v33 }
 0x15c   : > { %2384 = vmatmul.mubr.msk.bf16.vlgmr.msra.gmra.mrb[0].mxu1 %vm618_vm1, %v662_v35 }
 0x15d   : > { %2389 = vmatprep.mubr.msk.bf16.mxu1 %vm2689_vm2, %v2688_v17 }
 0x22f   : > { %v716_v36 = vpop.f32.mrb[0].mxu1 }
 0x230   : > { %v2882_v37 = vpack.c.bf16 %v716_v36, %v716_v36  ;;  %v2385_v38 = vpop.f32.mrb[1].mxu1 }
 0x231   : > { %v719_v39 = vpop.f32.mrb[2].mxu1 }
 0x232   : > { %v2884_v40 = vpack.c.bf16 %v719_v39, %v719_v39  ;;  %733 = vrot.lane.b32.xlu0 %v2882_v37, %s2690_s24  ;;  %v2386_v41 = vpop.f32.mrb[3].mxu1 }
 0x234   : > { %782 = vrot.lane.b32.xlu1 %v2884_v40, %s2690_s24  ;;  %s3185_s24 = scalar_lea.vmem %s3164_s6, %s2789_s26 }
 0x2a4   : > { %v734_v42 = vpop.permute.xlu0 %733 }
 0x2a5   : > { %v740_v43 = vsel %vm735_vm3, %v734_v42, 0 }
 0x2a6   : > { %2388 = vmatpush3.bf16.xpose.msra.mxu1 %v740_v43  ;;  %v783_v44 = vpop.permute.xlu1 %782 }
 0x2a7   : > { %2393 = vmatprep.subr.bf16.mxu1 %v2688_v17  ;;  %v788_v45 = vsel %vm735_vm3, %v783_v44, 0 }
 0x2ad   : > { %2390 = vmatmul.mubr.msk.bf16.vlgmr.msra.gmra.mrb[4].mxu1 %vm735_vm3, %v2882_v37 }
 0x2ae   : > { %2394 = vmatpush3.bf16.xpose.msra.mxu1 %v788_v45  ;;  %2395 = vmatprep.mubr.msk.bf16.mxu1 %vm2689_vm2, %v2688_v17 }
 0x2af   : > { %2399 = vmatprep.subr.bf16.mxu1 %v2688_v17 }
 0x2b5   : > { %2396 = vmatmul.mubr.msk.bf16.vlgmr.msra.gmra.mrb[8].mxu1 %vm735_vm3, %v2884_v40 }
 0x2b6   : > { %2401 = vmatprep.mubr.msk.bf16.mxu1 %vm2689_vm2, %v2688_v17 }
 0x380   : > { %v776_v51 = vpop.f32.mrb[4].mxu1 }
 0x381   : > { %v777_v52 = vadd.f32 %v776_v51, %v2900_v50  ;;  %v2391_v53 = vpop.f32.mrb[5].mxu1 }
 0x382   : > { %v779_v54 = vpop.f32.mrb[6].mxu1 }
 0x383   : > { %v2392_v55 = vpop.f32.mrb[7].mxu1  ;;  %v830_v56 = vsel %vm735_vm3, %v777_v52, -inf }
 0x384   : > { %831 = vmax.xlane.f32.xlu1 %v830_v56 }
 0x388   : > { %v824_v57 = vpop.f32.mrb[8].mxu1 }
 0x389   : > { %v825_v58 = vadd.f32 %v824_v57, %v2900_v50  ;;  %v2397_v59 = vpop.f32.mrb[9].mxu1 }
 0x38a   : > { %v827_v60 = vpop.f32.mrb[10].mxu1 }
 0x38b   : > { %v2398_v61 = vpop.f32.mrb[11].mxu1  ;;  %v833_v62 = vsel %vm735_vm3, %v825_v58, -inf }
 0x38c   : > { %834 = vmax.xlane.f32.xlu0 %v833_v62 }
 0x395   : > { %903 = vrot.lane.b32.xlu1 %v2884_v40, %s2692_s28 }
 0x399   : > { %955 = vrot.lane.b32.xlu1 %v2882_v37, %s2693_s22 }
 0x411   : > { %v832_v63 = vpop.xlane.xlu1 %831 }
 0x412   : > { %v836_v0 = vsub.f32 %v777_v52, %v832_v63 }
 0x414   : > { %v838_v1 = vmul.f32 1.442695, %v836_v0 }
 0x415   : > { %v904_v4 = vpop.permute.xlu1 %903 }
 0x416   : > { %2598 = vpow2.f32 %v838_v1  ;;  %v909_v5 = vsel %vm859_vm5, %v904_v4, 0 }
 0x417   : > { %2406 = vmatpush3.bf16.msra.mxu0 %v909_v5 }
 0x418   : > { %2417 = vmatprep.subr.bf16.mxu0 %v2688_v17 }
 0x419   : > { %v835_v6 = vpop.xlane.xlu0 %834  ;;  %v956_v14 = vpop.permute.xlu1 %955 }
 0x41a   : > { %v837_v7 = vsub.f32 %v825_v58, %v835_v6  ;;  %v961_v22 = vsel %vm735_vm3, %v956_v14, 0 }
 0x41c   : > { %v840_v8 = vmul.f32 1.442695, %v837_v7 }
 0x41e   : > { %2600 = vpow2.f32 %v840_v8 }
 0x420   : > { %v2599_v9 = vpop.eup %2598 }
 0x421   : > { %v842_v10 = vsel %vm735_vm3, %v2599_v9, 0.0 }
 0x422   : > { %843 = vadd.xlane.f32.xlu0 %v842_v10 }
 0x428   : > { %v2601_v11 = vpop.eup %2600 }
 0x429   : > { %v845_v12 = vsel %vm735_vm3, %v2601_v11, 0.0 }
 0x42a   : > { %846 = vadd.xlane.f32.xlu1 %v845_v12  ;;  %v729_v12 = vld [vmem:[%s2812_s25] sm:$0xf] }
 0x438   : > { %854 = vrot.lane.b32.xlu0 %v2882_v37, %s2692_s28 }
 0x43b   : > { %1005 = vrot.lane.b32.xlu1 %v2884_v40, %s2693_s22 }
 0x43c   : > { %953 = vrot.lane.b32.xlu0 %v2882_v37, %s2694_s29 }
 0x43f   : > { %1003 = vrot.lane.b32.xlu1 %v2884_v40, %s2694_s29 }
 0x4af   : > { %v844_v13 = vpop.xlane.xlu0 %843 }
 0x4b0   : > { %2602 = vrcp.f32 %v844_v13 }
 0x4b3   : > { %v855_v15 = vpop.permute.xlu0 %854 }
 0x4b4   : > { %v861_v16 = vsel %vm859_vm5, %v855_v15, 0  ;;  %v1236_v15 = vsel %vm859_vm5, %v729_v12, 0 }
 0x4b5   : > { %2400 = vmatpush3.bf16.msra.mxu1 %v861_v16 }
 0x4b6   : > { %2411 = vmatprep.subr.bf16.mxu1 %v2688_v17 }
 0x4b7   : > { %v847_v18 = vpop.xlane.xlu1 %846  ;;  %v954_v27 = vpop.permute.xlu0 %953 }
 0x4b8   : > { %2604 = vrcp.f32 %v847_v18 }
 0x4ba   : > { %v2603_v19 = vpop.eup %2602 }
 0x4bb   : > { %v850_v20 = vmul.f32 %v2603_v19, %v2599_v9  ;;  %v1006_v25 = vpop.permute.xlu1 %1005 }
 0x4bc   : > { %v1011_v28 = vsel %vm735_vm3, %v1006_v25, 0 }
 0x4bd   : > { %v852_v21 = vpack.c.bf16 %v850_v20, %v850_v20 }
 0x4bf   : > { %2402 = vmatmul.mubr.msk.bf16.vlgmr.msra.gmra.mrb[12].mxu1 %vm735_vm3, %v852_v21  ;;  %v1004_v29 = vpop.permute.xlu1 %1003  ;;  %v730_v21 = vld [vmem:[%s2812_s25 + $0x4] sm:$0xf] }
 0x4c0   : > { %2412 = vmatpush3.bf16.xpose.msra.mxu1 %v961_v22  ;;  %2413 = vmatprep.mubr.msk.bf16.mxu1 %vm2689_vm2, %v2688_v17  ;;  %v1184_v22 = vsel %vm859_vm5, %v730_v21, 0 }
 0x4c1   : > { %2423 = vmatprep.subr.bf16.mxu1 %v2688_v17 }
 0x4c2   : > { %v2605_v23 = vpop.eup %2604 }
 0x4c3   : > { %v851_v24 = vmul.f32 %v2605_v23, %v2601_v11 }
 0x4c5   : > { %v853_v26 = vpack.c.bf16 %v851_v24, %v851_v24 }
 0x4c7   : > { %2408 = vmatmul.mubr.msk.bf16.vlgmr.msra.gmra.mrb[0].mxu0 %vm735_vm3, %v853_v26  ;;  %2414 = vmatmul.mubr.msk.bf16.vlgmr.msra.gmra.mrb[16].mxu1 %vm735_vm3, %v954_v27 }
 0x4c8   : > { %2418 = vmatpush3.bf16.xpose.msra.mxu0 %v1011_v28  ;;  %2419 = vmatprep.mubr.msk.bf16.mxu0 %vm2689_vm2, %v2688_v17 }
 0x4c9   : > { %2429 = vmatprep.subr.bf16.mxu0 %v2688_v17  ;;  %2425 = vmatprep.mubr.msk.bf16.mxu1 %vm2689_vm2, %v2688_v17 }
 0x4cf   : > { %2420 = vmatmul.mubr.msk.bf16.vlgmr.msra.gmra.mrb[4].mxu0 %vm735_vm3, %v1004_v29 }
 0x4d0   : > { %2431 = vmatprep.mubr.msk.bf16.mxu0 %vm2689_vm2, %v2688_v17 }
 0x592   : > { %v2934_v30 = vpop.f32.mrb[12].mxu1 }
 0x593   : > { %v2403_v31 = vpop.f32.mrb[13].mxu1 }
 0x594   : > { %v900_v32 = vpop.f32.mrb[14].mxu1 }
 0x595   : > { %v2404_v33 = vpop.f32.mrb[15].mxu1 }
 0x59a   : > { %v2936_v34 = vpop.f32.mrb[0].mxu0  ;;  %v997_v35 = vpop.f32.mrb[16].mxu1 }
 0x59b   : > { %v2321_v36 = vpack.c.bf16 %v2936_v34, %v2934_v30  ;;  %v998_v38 = vadd.f32 %v997_v35, %v2900_v50  ;;  %v2409_v39 = vpop.f32.mrb[1].mxu0  ;;  %v2415_v41 = vpop.f32.mrb[17].mxu1 }
 0x59c   : > { %v948_v42 = vpop.f32.mrb[2].mxu0  ;;  %v1000_v43 = vpop.f32.mrb[18].mxu1 }
 0x59d   : > { %v2410_v44 = vpop.f32.mrb[3].mxu0  ;;  %v2416_v45 = vpop.f32.mrb[19].mxu1  ;;  %v1053_v46 = vsel %vm735_vm3, %v998_v38, -inf }
 0x59e   : > { %1054 = vmax.xlane.f32.xlu0 %v1053_v46 }
 0x5a2   : > { %v1047_v47 = vpop.f32.mrb[4].mxu0 }
 0x5a3   : > { %v1048_v48 = vadd.f32 %v1047_v47, %v2900_v50  ;;  %v2421_v49 = vpop.f32.mrb[5].mxu0 }
 0x5a4   : > { %v1050_v51 = vpop.f32.mrb[6].mxu0 }
 0x5a5   : > { %v2422_v52 = vpop.f32.mrb[7].mxu0  ;;  %v1056_v53 = vsel %vm735_vm3, %v1048_v48, -inf }
 0x5a6   : > { %1057 = vmax.xlane.f32.xlu1 %v1056_v53 }
 0x5b7   : > { %1125 = vrot.lane.b32.xlu1 %v2884_v40, %s2695_s14 }
 0x5bb   : > { %1281 = vrot.lane.b32.xlu1 %v2882_v37, %s2696_s13 }
 0x5bf   : > { %1331 = vrot.lane.b32.xlu1 %v2884_v40, %s2696_s13 }
 0x5c3   : > { %1329 = vrot.lane.b32.xlu1 %v2884_v40, %s2697_s15 }
 0x62b   : > { %v1055_v54 = vpop.xlane.xlu0 %1054 }
 0x62c   : > { %v1059_v55 = vsub.f32 %v998_v38, %v1055_v54 }
 0x62e   : > { %v1061_v56 = vmul.f32 1.442695, %v1059_v55 }
 0x630   : > { %2606 = vpow2.f32 %v1061_v56 }
 0x633   : > { %v1058_v57 = vpop.xlane.xlu1 %1057 }
 0x634   : > { %v1060_v58 = vsub.f32 %v1048_v48, %v1058_v57 }
 0x636   : > { %v1063_v59 = vmul.f32 1.442695, %v1060_v58 }
 0x637   : > { %v1126_v60 = vpop.permute.xlu1 %1125 }
 0x638   : > { %2608 = vpow2.f32 %v1063_v59  ;;  %v1131_v61 = vsel %vm859_vm5, %v1126_v60, 0 }
 0x639   : > { %2430 = vmatpush3.bf16.msra.mxu0 %v1131_v61 }
 0x63a   : > { %v2607_v62 = vpop.eup %2606  ;;  %2441 = vmatprep.subr.bf16.mxu0 %v2688_v17 }
 0x63b   : > { %v1065_v63 = vsel %vm735_vm3, %v2607_v62, 0.0  ;;  %v1282_v16 = vpop.permute.xlu1 %1281 }
 0x63c   : > { %1066 = vadd.xlane.f32.xlu0 %v1065_v63  ;;  %v1287_v31 = vsel %vm735_vm3, %v1282_v16, 0 }
 0x63f   : > { %v1332_v18 = vpop.permute.xlu1 %1331 }
 0x640   : > { %v1337_v19 = vsel %vm735_vm3, %v1332_v18, 0 }
 0x642   : > { %v2609_v0 = vpop.eup %2608 }
 0x643   : > { %v1068_v1 = vsel %vm735_vm3, %v2609_v0, 0.0  ;;  %v1330_v20 = vpop.permute.xlu1 %1329 }
 0x644   : > { %1069 = vadd.xlane.f32.xlu0 %v1068_v1 }
 0x65a   : > { %1077 = vrot.lane.b32.xlu0 %v2882_v37, %s2695_s14 }
 0x65e   : > { %1279 = vrot.lane.b32.xlu0 %v2882_v37, %s2697_s15 }
 0x6c9   : > { %v1067_v4 = vpop.xlane.xlu0 %1066 }
 0x6ca   : > { %2610 = vrcp.f32 %v1067_v4 }
 0x6d1   : > { %v1070_v5 = vpop.xlane.xlu0 %1069 }
 0x6d2   : > { %2612 = vrcp.f32 %v1070_v5 }
 0x6d4   : > { %v2611_v6 = vpop.eup %2610 }
 0x6d5   : > { %v1073_v7 = vmul.f32 %v2611_v6, %v2607_v62  ;;  %v1078_v8 = vpop.permute.xlu0 %1077 }
 0x6d6   : > { %v1083_v9 = vsel %vm859_vm5, %v1078_v8, 0 }
 0x6d7   : > { %2424 = vmatpush3.bf16.msra.mxu1 %v1083_v9  ;;  %v1075_v10 = vpack.c.bf16 %v1073_v7, %v1073_v7 }
 0x6d8   : > { %2435 = vmatprep.subr.bf16.mxu1 %v2688_v17 }
 0x6d9   : > { %v1280_v35 = vpop.permute.xlu0 %1279 }
 0x6da   : > { %2426 = vmatmul.mubr.msk.bf16.vlgmr.msra.gmra.mrb[20].mxu1 %vm735_vm3, %v1075_v10 }
 0x6db   : > { %2437 = vmatprep.mubr.msk.bf16.mxu1 %vm2689_vm2, %v2688_v17  ;;  %2436 = vmatpush3.bf16.msra.mxu1 %v1184_v22 }
 0x6dc   : > { %v2613_v11 = vpop.eup %2612  ;;  %2447 = vmatprep.subr.bf16.mxu1 %v2688_v17 }
 0x6dd   : > { %v1074_v13 = vmul.f32 %v2613_v11, %v2609_v0 }
 0x6df   : > { %v1076_v14 = vpack.c.bf16 %v1074_v13, %v1074_v13 }
 0x6e1   : > { %2432 = vmatmul.mubr.msk.bf16.vlgmr.msra.gmra.mrb[8].mxu0 %vm735_vm3, %v1076_v14 }
 0x6e2   : > { %2442 = vmatpush3.bf16.msra.mxu0 %v1236_v15  ;;  %2443 = vmatprep.mubr.msk.bf16.mxu0 %vm2689_vm2, %v2688_v17 }
 0x6e3   : > { %2453 = vmatprep.subr.bf16.mxu0 %v2688_v17 }
 0x6e9   : > { %2444 = vmatmul.mubr.msk.bf16.vlgmr.msra.gmra.mrb[12].mxu0 %vm735_vm3, %v2321_v36 }
 0x6ea   : > { %2455 = vmatprep.mubr.msk.bf16.mxu0 %vm2689_vm2, %v2688_v17 }
 0x6eb   : > { %2454 = vmatpush3.bf16.xpose.msra.mxu0 %v1337_v19 }
 0x6ec   : > { %2465 = vmatprep.subr.bf16.mxu0 %v2688_v17 }
 0x6f2   : > { %2456 = vmatmul.mubr.msk.bf16.vlgmr.msra.gmra.mrb[16].mxu0 %vm735_vm3, %v1330_v20 }
 0x6f3   : > { %2467 = vmatprep.mubr.msk.bf16.mxu0 %vm2689_vm2, %v2688_v17 }
 0x7ad   : > { %v1119_v23 = vpop.f32.mrb[20].mxu1 }
 0x7ae   : > { %v2427_v24 = vpop.f32.mrb[21].mxu1 }
 0x7af   : > { %v1122_v25 = vpop.f32.mrb[22].mxu1 }
 0x7b0   : > { %v2428_v26 = vpop.f32.mrb[23].mxu1 }
 0x7b4   : > { %v1167_v27 = vpop.f32.mrb[8].mxu0 }
 0x7b5   : > { %v2320_v28 = vpack.c.bf16 %v1167_v27, %v1119_v23  ;;  %v2433_v29 = vpop.f32.mrb[9].mxu0  ;;  %v731_v27 = vld [vmem:[%s2812_s25 + $0x8] sm:$0xf] }
 0x7b6   : > { %v1170_v30 = vpop.f32.mrb[10].mxu0 }
 0x7b7   : > { %v2434_v32 = vpop.f32.mrb[11].mxu0  ;;  %2438 = vmatmul.mubr.msk.bf16.vlgmr.msra.gmra.mrb[24].mxu1 %vm735_vm3, %v2320_v28  ;;  %v1510_v28 = vsel %vm859_vm5, %v731_v27, 0 }
 0x7b8   : > { %2448 = vmatpush3.bf16.xpose.msra.mxu1 %v1287_v31  ;;  %2449 = vmatprep.mubr.msk.bf16.mxu1 %vm2689_vm2, %v2688_v17 }
 0x7b9   : > { %2459 = vmatprep.subr.bf16.mxu1 %v2688_v17 }
 0x7bc   : > { %v1272_v33 = vpop.f32.mrb[12].mxu0 }
 0x7bd   : > { %v2445_v34 = vpop.f32.mrb[13].mxu0 }
 0x7be   : > { %v1275_v36 = vpop.f32.mrb[14].mxu0 }
 0x7bf   : > { %v2446_v38 = vpop.f32.mrb[15].mxu0  ;;  %2450 = vmatmul.mubr.msk.bf16.vlgmr.msra.gmra.mrb[28].mxu1 %vm735_vm3, %v1280_v35 }
 0x7c0   : > { %2461 = vmatprep.mubr.msk.bf16.mxu1 %vm2689_vm2, %v2688_v17 }
 0x7c5   : > { %v1373_v39 = vpop.f32.mrb[16].mxu0 }
 0x7c6   : > { %v1374_v41 = vadd.f32 %v1373_v39, %v2900_v50  ;;  %v2457_v42 = vpop.f32.mrb[17].mxu0 }
 0x7c7   : > { %v1376_v43 = vpop.f32.mrb[18].mxu0 }
 0x7c8   : > { %v2458_v44 = vpop.f32.mrb[19].mxu0  ;;  %v1382_v45 = vsel %vm735_vm3, %v1374_v41, -inf }
 0x7c9   : > { %1383 = vmax.xlane.f32.xlu1 %v1382_v45 }
 0x7da   : > { %1451 = vrot.lane.b32.xlu1 %v2884_v40, %s2698_s16 }
 0x7de   : > { %1557 = vrot.lane.b32.xlu1 %v2882_v37, %s2699_s4 }
 0x7e2   : > { %1607 = vrot.lane.b32.xlu1 %v2884_v40, %s2699_s4 }
 0x7e6   : > { %1605 = vrot.lane.b32.xlu1 %v2884_v40, %s2700_s21 }
 0x856   : > { %v1384_v46 = vpop.xlane.xlu1 %1383 }
 0x857   : > { %v1386_v49 = vsub.f32 %v1374_v41, %v1384_v46 }
 0x859   : > { %v1389_v51 = vmul.f32 1.442695, %v1386_v49 }
 0x85a   : > { %v1452_v47 = vpop.permute.xlu1 %1451 }
 0x85b   : > { %v1457_v48 = vsel %vm859_vm5, %v1452_v47, 0  ;;  %2614 = vpow2.f32 %v1389_v51 }
 0x85c   : > { %2466 = vmatpush3.bf16.msra.mxu0 %v1457_v48 }
 0x85d   : > { %2477 = vmatprep.subr.bf16.mxu0 %v2688_v17 }
 0x85e   : > { %v1558_v12 = vpop.permute.xlu1 %1557 }
 0x85f   : > { %v1563_v14 = vsel %vm735_vm3, %v1558_v12, 0 }
 0x862   : > { %v1608_v35 = vpop.permute.xlu1 %1607 }
 0x863   : > { %v1613_v42 = vsel %vm735_vm3, %v1608_v35, 0 }
 0x865   : > { %v2615_v0 = vpop.eup %2614 }
 0x866   : > { %v1394_v1 = vsel %vm735_vm3, %v2615_v0, 0.0  ;;  %v1606_v44 = vpop.permute.xlu1 %1605 }
 0x88a   : > { %v1220_v52 = vpop.f32.mrb[24].mxu1 }
 0x88b   : > { %v2997_v53 = vadd.f32 %v1272_v33, %v1220_v52  ;;  %v2439_v54 = vpop.f32.mrb[25].mxu1 }
 0x88c   : > { %v1223_v55 = vpop.f32.mrb[26].mxu1 }
 0x88d   : > { %v2999_v56 = vadd.f32 %v1275_v36, %v1223_v55  ;;  %v2440_v57 = vpop.f32.mrb[27].mxu1 }
 0x892   : > { %v1323_v58 = vpop.f32.mrb[28].mxu1 }
 0x893   : > { %v1324_v59 = vadd.f32 %v1323_v58, %v2900_v50  ;;  %v2451_v60 = vpop.f32.mrb[29].mxu1 }
 0x894   : > { %v1326_v61 = vpop.f32.mrb[30].mxu1 }
 0x895   : > { %v2452_v62 = vpop.f32.mrb[31].mxu1  ;;  %v1379_v63 = vsel %vm735_vm3, %v1324_v59, -inf }
 0x896   : > { %1380 = vmax.xlane.f32.xlu0 %v1379_v63 }
 0x89a   : > { %1395 = vadd.xlane.f32.xlu0 %v1394_v1 }
 0x923   : > { %v1381_v4 = vpop.xlane.xlu0 %1380 }
 0x924   : > { %v1385_v5 = vsub.f32 %v1324_v59, %v1381_v4 }
 0x926   : > { %v1387_v6 = vmul.f32 1.442695, %v1385_v5 }
 0x927   : > { %v1396_v7 = vpop.xlane.xlu0 %1395 }
 0x928   : > { %2616 = vpow2.f32 %v1387_v6 }
 0x929   : > { %2618 = vrcp.f32 %v1396_v7 }
 0x932   : > { %v2617_v8 = vpop.eup %2616 }
 0x933   : > { %v2619_v9 = vpop.eup %2618  ;;  %v1391_v10 = vsel %vm735_vm3, %v2617_v8, 0.0 }
 0x934   : > { %v1400_v11 = vmul.f32 %v2619_v9, %v2615_v0  ;;  %1392 = vadd.xlane.f32.xlu0 %v1391_v10 }
 0x936   : > { %v1402_v13 = vpack.c.bf16 %v1400_v11, %v1400_v11 }
 0x938   : > { %2468 = vmatmul.mubr.msk.bf16.vlgmr.msra.gmra.mrb[20].mxu0 %vm735_vm3, %v1402_v13 }
 0x939   : > { %2478 = vmatpush3.bf16.xpose.msra.mxu0 %v1563_v14  ;;  %2479 = vmatprep.mubr.msk.bf16.mxu0 %vm2689_vm2, %v2688_v17 }
 0x93a   : > { %2489 = vmatprep.subr.bf16.mxu0 %v2688_v17 }
 0x94a   : > { %1403 = vrot.lane.b32.xlu0 %v2882_v37, %s2698_s16 }
 0x94e   : > { %1555 = vrot.lane.b32.xlu0 %v2882_v37, %s2700_s21 }
 0x9c1   : > { %v1393_v15 = vpop.xlane.xlu0 %1392 }
 0x9c2   : > { %2620 = vrcp.f32 %v1393_v15  ;;  %v732_v15 = vld [vmem:[%s2812_s25 + $0xc] sm:$0xf] }
 0x9c5   : > { %v1404_v16 = vpop.permute.xlu0 %1403 }
 0x9c6   : > { %v1409_v18 = vsel %vm859_vm5, %v1404_v16, 0  ;;  %v1786_v16 = vsel %vm859_vm5, %v732_v15, 0 }
 0x9c7   : > { %2460 = vmatpush3.bf16.msra.mxu1 %v1409_v18 }
 0x9c8   : > { %2471 = vmatprep.subr.bf16.mxu1 %v2688_v17 }
 0x9c9   : > { %v1556_v19 = vpop.permute.xlu0 %1555 }
 0x9ca   : > { %2480 = vmatmul.mubr.msk.bf16.vlgmr.msra.gmra.mrb[24].mxu0 %vm735_vm3, %v1556_v19 }
 0x9cb   : > { %2491 = vmatprep.mubr.msk.bf16.mxu0 %vm2689_vm2, %v2688_v17 }
 0x9cc   : > { %v2621_v20 = vpop.eup %2620 }
 0x9cd   : > { %v1399_v21 = vmul.f32 %v2621_v20, %v2617_v8 }
 0x9cf   : > { %v1401_v22 = vpack.c.bf16 %v1399_v21, %v1399_v21 }
 0x9d1   : > { %2462 = vmatmul.mubr.msk.bf16.vlgmr.msra.gmra.mrb[32].mxu1 %vm735_vm3, %v1401_v22 }
 0x9d2   : > { %2473 = vmatprep.mubr.msk.bf16.mxu1 %vm2689_vm2, %v2688_v17  ;;  %2472 = vmatpush3.bf16.msra.mxu1 %v1510_v28 }
 0x9d3   : > { %2483 = vmatprep.subr.bf16.mxu1 %v2688_v17 }
 0xa0b   : > { %v1493_v23 = vpop.f32.mrb[20].mxu0 }
 0xa0c   : > { %v2469_v24 = vpop.f32.mrb[21].mxu0 }
 0xa0d   : > { %v1496_v25 = vpop.f32.mrb[22].mxu0 }
 0xa0e   : > { %v2470_v26 = vpop.f32.mrb[23].mxu0 }
 0xa9d   : > { %v1599_v29 = vpop.f32.mrb[24].mxu0 }
 0xa9e   : > { %v1600_v30 = vadd.f32 %v1599_v29, %v2900_v50  ;;  %v2481_v31 = vpop.f32.mrb[25].mxu0 }
 0xa9f   : > { %v1602_v32 = vpop.f32.mrb[26].mxu0 }
 0xaa0   : > { %v2482_v33 = vpop.f32.mrb[27].mxu0  ;;  %v1655_v34 = vsel %vm735_vm3, %v1600_v30, -inf }
 0xaa1   : > { %1656 = vmax.xlane.f32.xlu0 %v1655_v34 }
 0xaa4   : > { %v1445_v36 = vpop.f32.mrb[32].mxu1 }
 0xaa5   : > { %v2322_v38 = vpack.c.bf16 %v1493_v23, %v1445_v36  ;;  %v2463_v39 = vpop.f32.mrb[33].mxu1 }
 0xaa6   : > { %v1448_v41 = vpop.f32.mrb[34].mxu1 }
 0xaa7   : > { %v2464_v43 = vpop.f32.mrb[35].mxu1  ;;  %2474 = vmatmul.mubr.msk.bf16.vlgmr.msra.gmra.mrb[36].mxu1 %vm735_vm3, %v2322_v38 }
 0xaa8   : > { %2484 = vmatpush3.bf16.xpose.msra.mxu1 %v1613_v42  ;;  %2485 = vmatprep.mubr.msk.bf16.mxu1 %vm2689_vm2, %v2688_v17 }
 0xaa9   : > { %2495 = vmatprep.subr.bf16.mxu1 %v2688_v17 }
 0xaaf   : > { %2486 = vmatmul.mubr.msk.bf16.vlgmr.msra.gmra.mrb[40].mxu1 %vm735_vm3, %v1606_v44 }
 0xab0   : > { %2497 = vmatprep.mubr.msk.bf16.mxu1 %vm2689_vm2, %v2688_v17 }
 0xb2e   : > { %v1657_v45 = vpop.xlane.xlu0 %1656 }
 0xb2f   : > { %v1661_v46 = vsub.f32 %v1600_v30, %v1657_v45  ;;  %v2294_v30 = vld [vmem:[%s3184_s19] ss:$0 sm:$0xff] }
 0xb31   : > { %v1663_v47 = vmul.f32 1.442695, %v1661_v46 }
 0xb33   : > { %2622 = vpow2.f32 %v1663_v47 }
 0xb3d   : > { %v2623_v48 = vpop.eup %2622 }
 0xb3e   : > { %v1667_v49 = vsel %vm735_vm3, %v2623_v48, 0.0 }
 0xb3f   : > { %1668 = vadd.xlane.f32.xlu0 %v1667_v49 }
 0xb7a   : > { %v1546_v51 = vpop.f32.mrb[36].mxu1 }
 0xb7b   : > { %v1553_v52 = vadd.f32 %v1546_v51, %v2997_v53  ;;  %v2475_v54 = vpop.f32.mrb[37].mxu1  ;;  %v2584_v51 = vld [vmem:[%s2825_s18] sm:$0xff]  }
 0xb7c   : > { %v1549_v55 = vpop.f32.mrb[38].mxu1  ;;  %v2586_v54 = vld [vmem:[%s2839_s30] sm:$0xff]  }
 0xb7d   : > { %v1554_v57 = vadd.f32 %v1549_v55, %v2999_v56  ;;  %v2476_v58 = vpop.f32.mrb[39].mxu1  ;;  %v2587_v55 = vld [vmem:[%s2839_s30 + $0x8] sm:$0xff]  }
 0xb7e   : > { %v2589_v58 = vld [vmem:[%s2839_s30 + $0x18] sm:$0xff]  }
 0xb82   : > { %v1649_v59 = vpop.f32.mrb[40].mxu1 }
 0xb83   : > { %v1650_v60 = vadd.f32 %v1649_v59, %v2900_v50  ;;  %v2487_v61 = vpop.f32.mrb[41].mxu1  ;;  %v2590_v59 = vld [vmem:[%s2839_s30 + $0x20] sm:$0xff]  }
 0xb84   : > { %v1652_v62 = vpop.f32.mrb[42].mxu1 }
 0xb85   : > { %v2488_v63 = vpop.f32.mrb[43].mxu1  ;;  %v1658_v0 = vsel %vm735_vm3, %v1650_v60, -inf }
 0xb86   : > { %1659 = vmax.xlane.f32.xlu1 %v1658_v0 }
 0xb97   : > { %1727 = vrot.lane.b32.xlu1 %v2884_v40, %s2701_s27 }
 0xbcc   : > { %v1669_v7 = vpop.xlane.xlu0 %1668 }
 0xc13   : > { %v1660_v1 = vpop.xlane.xlu1 %1659 }
 0xc14   : > { %v1662_v4 = vsub.f32 %v1650_v60, %v1660_v1  ;;  %v2591_v60 = vld [vmem:[%s2839_s30 + $0x28] sm:$0xff]  }
 0xc16   : > { %v1665_v53 = vmul.f32 1.442695, %v1662_v4 }
 0xc17   : > { %v1728_v5 = vpop.permute.xlu1 %1727 }
 0xc18   : > { %2624 = vpow2.f32 %v1665_v53  ;;  %v1733_v56 = vsel %vm859_vm5, %v1728_v5, 0  ;;  %v2295_v5 = vld [vmem:[%s3185_s24] ss:$0 sm:$0xff] }
 0xc19   : > { %2496 = vmatpush3.bf16.msra.mxu1 %v1733_v56  ;;  %2626 = vrcp.f32 %v1669_v7 }
 0xc1a   : > { %2507 = vmatprep.subr.bf16.mxu1 %v2688_v17 }
 0xc22   : > { %v2625_v50 = vpop.eup %2624 }
 0xc23   : > { %v1670_v6 = vsel %vm735_vm3, %v2625_v50, 0.0  ;;  %v2627_v8 = vpop.eup %2626 }
 0xc24   : > { %1671 = vadd.xlane.f32.xlu0 %v1670_v6  ;;  %v1675_v9 = vmul.f32 %v2627_v8, %v2623_v48  ;;  %v2296_v8 = vld [vmem:[%s580_s12] ss:$0 sm:$0xff]  ;;  %s3186_s12 = sld [smem:[#allocation6_spill]] }
 0xc26   : > { %v1677_v12 = vpack.c.bf16 %v1675_v9, %v1675_v9 }
 0xc2a   : > { %s3187_s16 = sadd.s32 4294967295, %s3186_s12  }
 0xc2b   : > { %p3120_p6 = scmp.eq.s32.totalorder %s3187_s16, 1 }
 0xc3a   : > { %1679 = vrot.lane.b32.xlu0 %v2882_v37, %s2701_s27 }
 0xcb1   : > { %v1672_v40 = vpop.xlane.xlu0 %1671 }
 0xcb2   : > { %2628 = vrcp.f32 %v1672_v40 }
 0xcb5   : > { %v1680_v10 = vpop.permute.xlu0 %1679 }
 0xcb6   : > { %v1685_v11 = vsel %vm859_vm5, %v1680_v10, 0 }
 0xcb7   : > { %2490 = vmatpush3.bf16.msra.mxu0 %v1685_v11 }
 0xcb8   : > { %2501 = vmatprep.subr.bf16.mxu0 %v2688_v17 }
 0xcba   : > { %2492 = vmatmul.mubr.msk.bf16.vlgmr.msra.gmra.mrb[28].mxu0 %vm735_vm3, %v1677_v12  ;;  %v2592_v12 = vld [vmem:[%s2839_s30 + $0x30] sm:$0xff]  }
 0xcbb   : > { %2503 = vmatprep.mubr.msk.bf16.mxu0 %vm2689_vm2, %v2688_v17  ;;  %2502 = vmatpush3.bf16.msra.mxu0 %v1786_v16 }
 0xcbc   : > { %v2629_v37 = vpop.eup %2628  ;;  %2515 = vmatprep.subr.bf16.mxu0 %v2688_v17 }
 0xcbd   : > { %v1676_v13 = vmul.f32 %v2629_v37, %v2625_v50  ;;  %v2593_v37 = vld [vmem:[%s2839_s30 + $0x38] sm:$0xff]  }
 0xcbf   : > { %v1678_v14 = vpack.c.bf16 %v1676_v13, %v1676_v13  ;;  %v2297_v13 = vld [vmem:[%s588_s3] ss:$0 sm:$0xff]  ;;  %s2702_s3 = smov [#allocation2]  }
 0xcc1   : > { %2498 = vmatmul.mubr.msk.bf16.vlgmr.msra.gmra.mrb[44].mxu1 %vm735_vm3, %v1678_v14 }
 0xcc2   : > { %2511 = vmatprep.mubr.msk.bf16.mxu1 %vm2689_vm2, %v2688_v17  ;;  %2508 = vmatpush3.bf16.msra.mxu1 %v2584_v51 }
 0xcc3   : > { %2509 = vmatprep.subr.bf16.mxu1 %v2688_v17 }
 0xd8d   : > { %v1721_v18 = vpop.f32.mrb[28].mxu0 }
 0xd8e   : > { %v2493_v19 = vpop.f32.mrb[29].mxu0 }
 0xd8f   : > { %v1724_v20 = vpop.f32.mrb[30].mxu0 }
 0xd90   : > { %v2494_v21 = vpop.f32.mrb[31].mxu0 }
 0xd94   : > { %v1769_v22 = vpop.f32.mrb[44].mxu1 }
 0xd95   : > { %v2323_v23 = vpack.c.bf16 %v1769_v22, %v1721_v18  ;;  %v2499_v24 = vpop.f32.mrb[45].mxu1 }
 0xd96   : > { %v1772_v25 = vpop.f32.mrb[46].mxu1 }
 0xd97   : > { %v2500_v26 = vpop.f32.mrb[47].mxu1  ;;  %2504 = vmatmul.mubr.msk.bf16.vlgmr.msra.gmra.mrb[32].mxu0 %vm735_vm3, %v2323_v23 }
 0xd98   : > { %2531 = vmatprep.mubr.msk.bf16.mxu0 %vm2689_vm2, %v2688_v17  ;;  %2516 = vmatpush3.bf16.msra.mxu0 %v2586_v54 }
 0xd99   : > { %2517 = vmatprep.subr.bf16.mxu0 %v2688_v17 }
 0xd9c   : > { %2518 = vmatpush3.bf16.msra.mxu0 %v2587_v55 }
 0xd9d   : > { %2519 = vmatprep.subr.bf16.mxu0 %v2688_v17 }
 0xe6a   : > { %v1822_v27 = vpop.f32.mrb[32].mxu0 }
 0xe6b   : > { %v1829_v28 = vadd.f32 %v1822_v27, %v1553_v52  ;;  %v2505_v29 = vpop.f32.mrb[33].mxu0  ;;  %v2585_v52 = vld [vmem:[%s2825_s18 + $0x8] sm:$0xff]  }
 0xe6c   : > { %v1825_v31 = vpop.f32.mrb[34].mxu0  ;;  %2510 = vmatpush3.bf16.msra.mxu1 %v2585_v52 }
 0xe6d   : > { %v1831_v32 = vadd.f32 %v1829_v28, %v2847_v2  ;;  %v1830_v33 = vadd.f32 %v1825_v31, %v1554_v57  ;;  %v2506_v34 = vpop.f32.mrb[35].mxu0  ;;  %v2588_v57 = vld [vmem:[%s2839_s30 + $0x10] sm:$0xff]   ;;  %s2082_s30 = sshll.u32 %s2702_s3, 4  ;;  %s2083_s30 = int_to_ptr.vmem [resolvable:$true] %s2082_s30 }
 0xe6e   : > { %2520 = vmatpush3.bf16.msra.mxu0 %v2588_v57  ;;  %p2641_p10 = scmp.lt.s32.totalorder %s2083_s30, %s2083_s30 }
 0xe6f   : > { %v3065_v35 = vadd.f32 %v2294_v30, %v1831_v32  ;;  %v1832_v36 = vadd.f32 %v1830_v33, %v2849_v3  ;;  %2521 = vmatprep.subr.bf16.mxu0 %v2688_v17 }
 0xe71   : > { %v3068_v38 = vadd.f32 %v2294_v30, %v1832_v36  ;;  %v1844_v39 = vsel %vm618_vm1, %v3065_v35, 0.0 }
 0xe72   : > { %1845 = vadd.xlane.f32.xlu1 %v1844_v39  ;;  %2522 = vmatpush3.bf16.msra.mxu0 %v2589_v58 }
 0xe73   : > { %v1847_v41 = vsel %vm618_vm1, %v3068_v38, 0.0  ;;  %2523 = vmatprep.subr.bf16.mxu0 %v2688_v17 }
 0xe74   : > { %1848 = vadd.xlane.f32.xlu0 %v1847_v41 }
 0xe76   : > { %2524 = vmatpush3.bf16.msra.mxu0 %v2590_v59 }
 0xe77   : > { %2525 = vmatprep.subr.bf16.mxu0 %v2688_v17 }
 0xe7a   : > { %2526 = vmatpush3.bf16.msra.mxu0 %v2591_v60 }
 0xe7b   : > { %2527 = vmatprep.subr.bf16.mxu0 %v2688_v17 }
 0xe7e   : > { %2528 = vmatpush3.bf16.msra.mxu0 %v2592_v12 }
 0xe7f   : > { %2529 = vmatprep.subr.bf16.mxu0 %v2688_v17  ;;  %v2301_v17 = vld [vmem:[%s596_s23] ss:$0 sm:$0xff]  ;;  %s2634_s23 = scalar_lea.vmem %s2083_s30, 256 }
 0xe80   : > { %p2635_p7 = scmp.ne.s32.totalorder %s2083_s30, %s2634_s23  ;;  %p2642_p11 = scmp.lt.s32.totalorder %s2634_s23, %s2634_s23 }
 0xe82   : > { %2530 = vmatpush3.bf16.msra.mxu0 %v2593_v37  ;;  %p2636_p8 = pnand %p2635_p7, %p3120_p6  ;;  %p2643_p12 = por %p2642_p11, %p2641_p10 }
 0xe84   : > { %p2637_p9 = pneg %p2636_p8 }
 0xe86   : > { %p2644_p13 = pnand %p2643_p12, %p2637_p9 }
 0xeff   : > { %v1846_v42 = vpop.xlane.xlu1 %1845 }
 0xf00   : > { %v1850_v2 = vmul.f32 0.03125, %v1846_v42 }
 0xf01   : > { %v1849_v43 = vpop.xlane.xlu0 %1848 }
 0xf02   : > { %v1852_v44 = vsub.f32 %v3065_v35, %v1850_v2  ;;  %v1851_v3 = vmul.f32 0.03125, %v1849_v43 }
 0xf04   : > { %v1853_v45 = vsub.f32 %v3068_v38, %v1851_v3  ;;  %v1854_v46 = vmul.f32 %v1852_v44, %v1852_v44 }
 0xf06   : > { %v1856_v47 = vsel %vm618_vm1, %v1854_v46, 0.0  ;;  %v1855_v48 = vmul.f32 %v1853_v45, %v1853_v45 }
 0xf07   : > { %1857 = vadd.xlane.f32.xlu0 %v1856_v47 }
 0xf08   : > { %v1859_v49 = vsel %vm618_vm1, %v1855_v48, 0.0 }
 0xf09   : > { %1860 = vadd.xlane.f32.xlu1 %v1859_v49 }
 0xf94   : > { %v1858_v61 = vpop.xlane.xlu0 %1857 }
 0xf95   : > { %v1862_v62 = vmul.f32 0.03125, %v1858_v61 }
 0xf96   : > { %v1861_v63 = vpop.xlane.xlu1 %1860 }
 0xf97   : > { %v1864_v0 = vadd.f32 1e-05, %v1862_v62  ;;  %v1863_v1 = vmul.f32 0.03125, %v1861_v63 }
 0xf99   : > { %2630 = vrsqrt.f32 %v1864_v0  ;;  %v1865_v4 = vadd.f32 1e-05, %v1863_v1 }
 0xf9b   : > { %2632 = vrsqrt.f32 %v1865_v4 }
 0xfa3   : > { %v2631_v53 = vpop.eup %2630 }
 0xfa4   : > { %v1868_v56 = vmul.f32 %v2631_v53, %v1852_v44 }
 0xfa5   : > { %v2633_v50 = vpop.eup %2632 }
 0xfa6   : > { %v1876_v6 = vmul.f32 %v2295_v5, %v1868_v56  ;;  %v1869_v7 = vmul.f32 %v2633_v50, %v1853_v45 }
 0xfa8   : > { %v1877_v40 = vmul.f32 %v2295_v5, %v1869_v7  ;;  %v1884_v9 = vadd.f32 %v2296_v8, %v1876_v6 }
 0xfaa   : > { %v1885_v10 = vadd.f32 %v2296_v8, %v1877_v40 }
 0xfac   : > { %v1886_v11 = vpack.c.bf16 %v1885_v10, %v1884_v9 }
 0xfae   : > { %2512 = vmatmul.mubr.msk.bf16.vlgmr.msra.gmra.mrb[48].mxu1 %vm618_vm1, %v1886_v11 }
0x1081   : > { %v1947_v14 = vpop.f32.mrb[48].mxu1 }
0x1082   : > { %v1948_v15 = vadd.f32 %v2297_v13, %v1947_v14  ;;  %v2513_v16 = vpop.f32.mrb[49].mxu1 }
0x1083   : > { %v1950_v18 = vpop.f32.mrb[50].mxu1 }
0x1084   : > { %v1951_v19 = vadd.f32 %v2297_v13, %v1950_v18  ;;  %v2514_v20 = vpop.f32.mrb[51].mxu1  ;;  %v1954_v21 = vmax.f32 %v1948_v15, 0.0 }
0x1086   : > { %v1955_v22 = vmax.f32 %v1951_v19, 0.0 }
0x1088   : > { %v1956_v23 = vpack.c.bf16 %v1955_v22, %v1954_v21 }
0x108a   : > { %2532 = vmatmul.mubr.bf16.vlgmr.msra.gmra.mrb[36].mxu0 %v1956_v23 }
0x115d   : > { %v2062_v24 = vpop.f32.mrb[36].mxu0 }
0x115e   : > { %v2063_v25 = vadd.f32 %v2301_v17, %v2062_v24  ;;  %v2533_v26 = vpop.f32.mrb[37].mxu0 }
0x115f   : > { %v2065_v27 = vpop.f32.mrb[38].mxu0 }
0x1160   : > { %v2069_v28 = vadd.f32 %v2063_v25, %v3065_v35  ;;  %v2066_v29 = vadd.f32 %v2301_v17, %v2065_v27  ;;  %v2534_v30 = vpop.f32.mrb[39].mxu0 }
0x1162   : > { %2071 = vst.msk [vmem:[#allocation2] sm:$0xff] %vm618_vm1, %v2069_v28  ;;  %v2070_v31 = vadd.f32 %v2066_v29, %v3068_v38 }
0x1164   : > { %2072 = vst.msk [vmem:[#allocation2 + $0x8] sm:$0xff] %vm618_vm1, %v2070_v31 }
0x1165   : > { %2647 = shalt.err (!%p2644_p13)
}
0x1166   : > { %s3189_s27 = sld [smem:[#allocation10_spill]] }
0x116c   : > { %s2648_s25 = scalar_lea.hbm %s3189_s27, 256 }
0x116d   : > { %p2649_p0 = scmp.ne.s32.totalorder %s3189_s27, %s2648_s25  ;;  %p2654_p3 = scmp.lt.u32.totalorder %s2648_s25, %s3189_s27 }
0x116f   : > { %p2650_p1 = pnand %p2649_p0, %p3120_p6 }
0x1171   : > { %p2651_p2 = pneg %p2650_p1 }
0x1173   : > { %p2656_p4 = pnand %p2654_p3, %p2651_p2 }
0x1175   : > { %2659 = shalt.err (!%p2656_p4)
}
0x1176   : > { %s2703_s24 = smov 128   ;;  %s2704_s28 = smov 8  }
0x1177   : > { %2536 = dma.vmem_to_hbm [thread:$0]  (%p3120_p6), %s2083_s30, 256, %s3189_s27, [#allocation3], %s2703_s24, %s2703_s24, %s2704_s28  }
0x1178   : > { %2673 = dma.done.wait (%p3120_p6), [#allocation3], 256  }
0x1179   : > { %2675 = vsyncadd (%p3120_p6), [#allocation3], 4294967040 }
0x117a PF: > { %s3190_s14 = sld [smem:[#allocation6_spill]]  ;;  %s3191_s21 = sld [smem:[#allocation5_spill]] }
0x117b   : > { %s3192_s22 = sld [smem:[#allocation7_spill]] }
0x1180   : > { %s23_s23 = sadd.s32 1, %s3190_s14  }
0x1181   : > { %p20_p5 = scmp.ge.s32.totalorder %s23_s23, 4  }
0x1183   :  { %22 = sbr.rel (!%p20_p5) target bundleno = 6 (0x6), region = 133 }
0x118a   :  { %2098 = vsyncpa [#allocation3], 1 }
0x118b   :  { %2100 = vsyncpa [#allocation3 + $0x1], 1 }

</bundles_post_ra>
